<compile_context>
chip_gen: v6e
topology: v6e:2x2x1
jax: 0.10.0
libtpu: 0.0.40
codegen_flags: <defaults>
</compile_context>

<pallas_src>
import functools

import numpy as np

import jax
import jax.numpy as jnp
from jax.experimental import pallas as pl
from jax.experimental.pallas import tpu as pltpu

_K = 5         # conv kernel size
_OC1 = 6       # conv1 output channels
_OC2 = 16      # conv2 output channels
_HP = 128      # padded MLP width / lane-tile width


# ------------------------------- Pallas kernel -------------------------------

def _fused_cnn_kernel(x_ref, t1_ref, t2_ref, cb1_ref, cb2_ref,
                      w1_ref, fb1_ref, w2_ref, fb2_ref, w3_ref, fb3_ref,
                      o_ref, *, tb, gemm_dtype):
    """CNN_v1 forward for one tile of TB samples (one grid step).

    Sublane (row) convention everywhere: row = spatial_index * TB + sample.
    """
    f32 = jnp.float32
    xv = x_ref[0]                                    # [4, 6*TB, 5*28*C]

    # ---- conv1 (rows-only im2col GEMM, di folded into K) + 2x2 pool + ReLU --
    # xv[a0][iH*TB + tb, di*28C + w*C + c] = image[b, c, 4*iH + a0 + di, w]
    # GEMM output lanes: t*128 + x1*6 + oc  (t = pool-W parity, col q = 2*x1+t)
    h1 = []                                          # per H-parity ph: [6*TB, 128]
    for ph in range(2):                              # pool1 output-row parity
        best = None
        for s in range(2):                           # pool window H offset
            c1 = jnp.dot(xv[2 * ph + s].astype(gemm_dtype), t1_ref[...],
                         preferred_element_type=f32)            # [6*TB, 256]
            best = c1 if best is None else jnp.maximum(best, c1)
        wmax = jnp.maximum(best[:, :_HP], best[:, _HP:])        # aligned W-parity max
        h1.append(jnp.maximum(wmax + cb1_ref[...], 0.0))        # + bias, ReLU
        # h1[ph][iH*TB + tb, x1*6 + c] = pool1[b, c, 2*iH + ph, x1]

    # ---- conv2 (structured GEMM over kernel rows) + 2x2 pool + ReLU ---------
    # GEMM output lanes: v*128 + n*16 + oc  (v = pool-W parity, col = 2*n + v)
    h2m = None
    for u in range(2):                               # pool window H offset
        acc = None
        for di in range(_K):                         # conv kernel row
            a = u + di                               # pool1 row offset needed
            lhs = h1[a % 2][(a // 2) * tb:(a // 2 + 4) * tb, :]     # [4*TB, 128]
            part = jnp.dot(lhs.astype(gemm_dtype), t2_ref[di],
                           preferred_element_type=f32)              # [4*TB, 256]
            acc = part if acc is None else acc + part                # MRB-friendly chain
        h2m = acc if h2m is None else jnp.maximum(h2m, acc)          # pool over u
    h2 = jnp.maximum(jnp.maximum(h2m[:, :_HP], h2m[:, _HP:]) + cb2_ref[...], 0.0)
    # h2[m*TB + tb, n*16 + oc] = pool2[b, oc, m, n]   (lanes 64..127 are zero)

    # ---- flatten + MLP: fc1 as 4 accumulated chunk dots over m --------------
    acc = None
    for m in range(4):
        part = jnp.dot(h2[m * tb:(m + 1) * tb, :].astype(gemm_dtype), w1_ref[m],
                       preferred_element_type=f32)                   # [TB, 128]
        acc = part if acc is None else acc + part
    h = jnp.maximum(acc + fb1_ref[...], 0.0)
    h = jnp.maximum(jnp.dot(h.astype(gemm_dtype), w2_ref[...],
                            preferred_element_type=f32) + fb2_ref[...], 0.0)
    out = jnp.dot(h.astype(gemm_dtype), w3_ref[...],
                  preferred_element_type=f32) + fb3_ref[...]
    o_ref[0] = out                                   # lane-dense [TB, 128] store


# --------------------------- one-time weight prep ----------------------------

def prepare_params(p, num_channels, *, use_bf16=False):
    """Host-side, one-time prep: structured conv GEMM tables + padded MLP."""
    C = num_channels
    WC = 28 * C
    w1 = np.asarray(p["c1w"], np.float32)            # [6, C, 5, 5]
    b1 = np.asarray(p["c1b"], np.float32)
    w2 = np.asarray(p["c2w"], np.float32)            # [16, 6, 5, 5]
    b2 = np.asarray(p["c2b"], np.float32)

    # conv1 table (kernel-row di folded into K):
    #   T1[di*28C + (2*x1 + t + dj)*C + c, t*128 + x1*6 + oc] = w1[oc, c, di, dj]
    T1 = np.zeros((_K * WC, 2 * _HP), np.float32)
    for di in range(_K):
        for t in range(2):
            for x1 in range(12):
                col = t * _HP + x1 * _OC1
                for dj in range(_K):
                    w = 2 * x1 + t + dj
                    for c in range(C):
                        T1[di * WC + w * C + c, col:col + _OC1] = w1[:, c, di, dj]
    cb1 = np.zeros((1, _HP), np.float32)
    cb1[0, :12 * _OC1] = np.tile(b1, 12)             # lane = x1*6 + oc

    # conv2 table:
    #   T2[di, (2*n + v + dj)*6 + c, v*128 + n*16 + oc] = w2[oc, c, di, dj]
    T2 = np.zeros((_K, _HP, 2 * _HP), np.float32)
    for di in range(_K):
        for v in range(2):
            for n in range(4):
                col = v * _HP + n * _OC2
                for dj in range(_K):
                    x1 = 2 * n + v + dj
                    for c in range(_OC1):
                        T2[di, x1 * _OC1 + c, col:col + _OC2] = w2[:, c, di, dj]
    cb2 = np.zeros((1, _HP), np.float32)
    cb2[0, :4 * _OC2] = np.tile(b2, 4)               # lane = n*16 + oc

    f1w = np.asarray(p["f1w"], np.float32)           # [120, 256]
    f2w = np.asarray(p["f2w"], np.float32)           # [84, 120]
    f3w = np.asarray(p["f3w"], np.float32)           # [NC, 84]
    f1b = np.asarray(p["f1b"], np.float32)
    f2b = np.asarray(p["f2b"], np.float32)
    f3b = np.asarray(p["f3b"], np.float32)

    # fc1 split into 4 chunks over pool2 row m; input lane = n*16 + oc.
    # Torch flatten order of pool2 [16, 4, 4] is feature = oc*16 + m*4 + n.
    W1m = np.zeros((4, _HP, _HP), np.float32)
    for m in range(4):
        for n in range(4):
            for oc in range(_OC2):
                W1m[m, n * _OC2 + oc, :f1w.shape[0]] = f1w[:, oc * 16 + m * 4 + n]
    fb1 = np.zeros((1, _HP), np.float32); fb1[0, :f1b.shape[0]] = f1b
    W2p = np.zeros((_HP, _HP), np.float32); W2p[:f2w.shape[1], :f2w.shape[0]] = f2w.T
    fb2 = np.zeros((1, _HP), np.float32); fb2[0, :f2b.shape[0]] = f2b
    W3p = np.zeros((_HP, _HP), np.float32); W3p[:f3w.shape[1], :f3w.shape[0]] = f3w.T
    fb3 = np.zeros((1, _HP), np.float32); fb3[0, :f3b.shape[0]] = f3b

    gemm_dtype = jnp.bfloat16 if use_bf16 else jnp.float32
    gemm_keys = ("T1", "T2", "W1m", "W2p", "W3p")
    prep = dict(T1=T1, T2=T2, cb1=cb1, cb2=cb2,
                W1m=W1m, fb1=fb1, W2p=W2p, fb2=fb2, W3p=W3p, fb3=fb3)
    return {k: jnp.asarray(v, dtype=gemm_dtype if k in gemm_keys else jnp.float32)
            for k, v in prep.items()}


# ------------------------------- forward wrapper -----------------------------

def cnn_v1_forward(x, prep, *, num_classes, block_b=128):
    """Fused CNN_v1 forward.  x: [B, C, 28, 28] NCHW float32."""
    B, C, H, W = x.shape
    assert (H, W) == (28, 28), "CNN_v1 (fc1 in_features=256) implies 28x28 inputs"
    assert num_classes <= _HP

    TB = min(B, block_b)                             # samples per grid step
    ntiles = (B + TB - 1) // TB
    Bp = ntiles * TB

    # Host-side rows-only im2col (tiny; ~4x read amplification of ~3 KiB/sample):
    #   lhs[tile, a0, iH*TB + tb, di*28C + w*C + c] = x[tile*TB + tb, c, 4*iH + a0 + di, w]
    xpad = jnp.pad(x, ((0, Bp - B), (0, 0), (0, 0), (0, 0)))
    xr = xpad.transpose(0, 2, 3, 1).reshape(Bp, H, W * C)        # [Bp, row, w*C + c]
    ridx = (4 * np.arange(6)[:, None, None] + np.arange(4)[None, :, None]
            + np.arange(_K)[None, None, :])                      # [iH, a0, di]
    g = xr[:, ridx, :]                                           # [Bp, 6, 4, 5, W*C]
    g = g.reshape(ntiles, TB, 6, 4, _K * W * C)
    lhs = g.transpose(0, 3, 2, 1, 4).reshape(ntiles, 4, 6 * TB, _K * W * C)

    weight_args = (prep["T1"], prep["T2"], prep["cb1"], prep["cb2"],
                   prep["W1m"], prep["fb1"], prep["W2p"], prep["fb2"],
                   prep["W3p"], prep["fb3"])

    def _const_spec(a):
        # Weights: full-array resident blocks, never re-fetched across the grid.
        return pl.BlockSpec(a.shape, lambda i, _nd=a.ndim: (0,) * _nd)

    in_specs = [pl.BlockSpec((1, 4, 6 * TB, _K * W * C), lambda i: (i, 0, 0, 0))]
    in_specs += [_const_spec(a) for a in weight_args]

    out = pl.pallas_call(
        functools.partial(_fused_cnn_kernel, tb=TB, gemm_dtype=prep["T1"].dtype),
        out_shape=jax.ShapeDtypeStruct((ntiles, TB, _HP), jnp.float32),
        grid=(ntiles,),
        in_specs=in_specs,
        out_specs=pl.BlockSpec((1, TB, _HP), lambda i: (i, 0, 0)),
        compiler_params=pltpu.CompilerParams(
            # Batch tiles are independent; with >=2 tiles this axis can shard
            # across v7x's two TensorCores (use pltpu.CORE_PARALLEL there).
            dimension_semantics=("parallel",)),
    )(lhs, *weight_args)

    # Lane-dense kernel output; slice to num_classes here in the wrapper.
    return out.reshape(Bp, _HP)[:B, :num_classes]


# -------------------------- pure-JAX reference model -------------------------

def reference_forward(x, p):
    hi = jax.lax.Precision.HIGHEST

    def conv(x, w, b):
        y = jax.lax.conv_general_dilated(
            x, w, window_strides=(1, 1), padding="VALID",
            dimension_numbers=("NCHW", "OIHW", "NCHW"), precision=hi)
        return jnp.maximum(y + b[None, :, None, None], 0.0)

    def pool(x):
        B, C, H, W = x.shape
        return jnp.max(x.reshape(B, C, H // 2, 2, W // 2, 2), axis=(3, 5))

    h = pool(conv(x, p["c1w"], p["c1b"]))
    h = pool(conv(h, p["c2w"], p["c2b"]))
    h = h.reshape(h.shape[0], -1)
    h = jnp.maximum(jnp.dot(h, p["f1w"].T, precision=hi) + p["f1b"], 0.0)
    h = jnp.maximum(jnp.dot(h, p["f2w"].T, precision=hi) + p["f2b"], 0.0)
    return jnp.dot(h, p["f3w"].T, precision=hi) + p["f3b"]


# ----------------------------------- main -------------------------------------

if __name__ == "__main__":
    # args.num_channels = 1, args.num_classes = 10; fc1 expects 256 = 16*4*4,
    # which implies 28x28 inputs (MNIST-style).
    B, C, H, W = 2, 1, 28, 28
    num_classes = 10

    key = jax.random.PRNGKey(0)
    ks = jax.random.split(key, 11)

    def init(k, shape, scale=0.1):
        return scale * jax.random.normal(k, shape, dtype=jnp.float32)

    params = {
        "c1w": init(ks[0], (_OC1, C, _K, _K)),
        "c1b": init(ks[1], (_OC1,)),
        "c2w": init(ks[2], (_OC2, _OC1, _K, _K)),
        "c2b": init(ks[3], (_OC2,)),
        "f1w": init(ks[4], (120, 256)),
        "f1b": init(ks[5], (120,)),
        "f2w": init(ks[6], (84, 120)),
        "f2b": init(ks[7], (84,)),
        "f3w": init(ks[8], (num_classes, 84)),
        "f3b": init(ks[9], (num_classes,)),
    }
    x = jax.random.normal(ks[10], (B, C, H, W), dtype=jnp.float32)

    fwd = jax.jit(functools.partial(cnn_v1_forward, num_classes=num_classes))

    # f32 GEMM path: parity with the float32 PyTorch semantics.
    prep = prepare_params(params, C)                 # one-time host-side prep
    out = jax.block_until_ready(fwd(x, prep))
    ref = jax.block_until_ready(reference_forward(x, params))
    assert out.shape == (B, num_classes), out.shape
    err = float(jnp.max(jnp.abs(out - ref)))
    # Expected ~1e-6; the bound only needs to exclude structural/layout bugs
    # (which produce O(0.1..1) errors) while tolerating any DEFAULT-precision
    # f32 matmul emulation differences on either side.
    assert err < 2e-2, f"max abs err {err}"

    # bf16 GEMM-operand path (throughput mode, per the perf review) -- gated
    # behind a flag so the strict f32 parity check above is unaffected.
    prep_bf16 = prepare_params(params, C, use_bf16=True)
    out_bf16 = jax.block_until_ready(fwd(x, prep_bf16))
    err_bf16 = float(jnp.max(jnp.abs(out_bf16 - ref)))
    assert bool(jnp.all(jnp.isfinite(out_bf16))) and err_bf16 < 0.25, err_bf16

    print("KERNEL_OK")
</pallas_src>

<mosaic_0001>
module attributes {stable_mosaic.version = 11 : i64} {
  func.func @_fused_cnn_kernel(%arg0: i32, %arg1: memref<1x4x12x140xf32, #tpu.memory_space<vmem>>, %arg2: memref<140x256xf32, #tpu.memory_space<vmem>>, %arg3: memref<5x128x256xf32, #tpu.memory_space<vmem>>, %arg4: memref<1x128xf32, #tpu.memory_space<vmem>>, %arg5: memref<1x128xf32, #tpu.memory_space<vmem>>, %arg6: memref<4x128x128xf32, #tpu.memory_space<vmem>>, %arg7: memref<1x128xf32, #tpu.memory_space<vmem>>, %arg8: memref<128x128xf32, #tpu.memory_space<vmem>>, %arg9: memref<1x128xf32, #tpu.memory_space<vmem>>, %arg10: memref<128x128xf32, #tpu.memory_space<vmem>>, %arg11: memref<1x128xf32, #tpu.memory_space<vmem>>, %arg12: memref<1x2x128xf32, #tpu.memory_space<vmem>>) attributes {dimension_semantics = [#tpu.dimension_semantics<parallel>], iteration_bounds = array<i64: 1>, scalar_prefetch = 0 : i64, scratch_operands = 0 : i64, tpu.core_type = #tpu.core_type<tc>, window_params = [{transform_indices = @transform_0, window_bounds = array<i64: 1, 4, 12, 140>}, {pipeline_mode = #tpu.pipeline_mode<synchronous>, transform_indices = @transform_1, window_bounds = array<i64: 140, 256>}, {pipeline_mode = #tpu.pipeline_mode<synchronous>, transform_indices = @transform_2, window_bounds = array<i64: 5, 128, 256>}, {pipeline_mode = #tpu.pipeline_mode<synchronous>, transform_indices = @transform_3, window_bounds = array<i64: 1, 128>}, {pipeline_mode = #tpu.pipeline_mode<synchronous>, transform_indices = @transform_4, window_bounds = array<i64: 1, 128>}, {pipeline_mode = #tpu.pipeline_mode<synchronous>, transform_indices = @transform_5, window_bounds = array<i64: 4, 128, 128>}, {pipeline_mode = #tpu.pipeline_mode<synchronous>, transform_indices = @transform_6, window_bounds = array<i64: 1, 128>}, {pipeline_mode = #tpu.pipeline_mode<synchronous>, transform_indices = @transform_7, window_bounds = array<i64: 128, 128>}, {pipeline_mode = #tpu.pipeline_mode<synchronous>, transform_indices = @transform_8, window_bounds = array<i64: 1, 128>}, {pipeline_mode = #tpu.pipeline_mode<synchronous>, transform_indices = @transform_9, window_bounds = array<i64: 128, 128>}, {pipeline_mode = #tpu.pipeline_mode<synchronous>, transform_indices = @transform_10, window_bounds = array<i64: 1, 128>}, {transform_indices = @transform_11, window_bounds = array<i64: 1, 2, 128>}]} {
    %c0 = arith.constant 0 : index
    %c0_0 = arith.constant 0 : index
    %c0_1 = arith.constant 0 : index
    %c0_2 = arith.constant 0 : index
    %0 = vector.load %arg1[%c0, %c0_0, %c0_1, %c0_2] : memref<1x4x12x140xf32, #tpu.memory_space<vmem>>, vector<1x4x12x140xf32>
    %1 = vector.shape_cast %0 : vector<1x4x12x140xf32> to vector<4x12x140xf32>
    %2 = vector.extract_strided_slice %1 {offsets = [0, 0, 0], sizes = [1, 12, 140], strides = [1, 1, 1]} : vector<4x12x140xf32> to vector<1x12x140xf32>
    %3 = vector.shape_cast %2 : vector<1x12x140xf32> to vector<12x140xf32>
    %c0_3 = arith.constant 0 : index
    %c0_4 = arith.constant 0 : index
    %4 = vector.load %arg2[%c0_3, %c0_4] : memref<140x256xf32, #tpu.memory_space<vmem>>, vector<140x256xf32>
    %cst = arith.constant dense<0.000000e+00> : vector<12x256xf32>
    %5 = tpu.matmul %3, %4, %cst {dimension_numbers = #tpu.dot_dimension_numbers<[1], [0], [0], [1], [0, 0, 1, 1], [], []>} : vector<12x140xf32>, vector<140x256xf32>, vector<12x256xf32> -> vector<12x256xf32>
    %6 = vector.extract_strided_slice %1 {offsets = [1, 0, 0], sizes = [1, 12, 140], strides = [1, 1, 1]} : vector<4x12x140xf32> to vector<1x12x140xf32>
    %7 = vector.shape_cast %6 : vector<1x12x140xf32> to vector<12x140xf32>
    %c0_5 = arith.constant 0 : index
    %c0_6 = arith.constant 0 : index
    %8 = vector.load %arg2[%c0_5, %c0_6] : memref<140x256xf32, #tpu.memory_space<vmem>>, vector<140x256xf32>
    %cst_7 = arith.constant dense<0.000000e+00> : vector<12x256xf32>
    %9 = tpu.matmul %7, %8, %cst_7 {dimension_numbers = #tpu.dot_dimension_numbers<[1], [0], [0], [1], [0, 0, 1, 1], [], []>} : vector<12x140xf32>, vector<140x256xf32>, vector<12x256xf32> -> vector<12x256xf32>
    %10 = arith.maximumf %5, %9 : vector<12x256xf32>
    %11 = vector.extract_strided_slice %10 {offsets = [0, 0], sizes = [12, 128], strides = [1, 1]} : vector<12x256xf32> to vector<12x128xf32>
    %12 = vector.extract_strided_slice %10 {offsets = [0, 128], sizes = [12, 128], strides = [1, 1]} : vector<12x256xf32> to vector<12x128xf32>
    %13 = arith.maximumf %11, %12 : vector<12x128xf32>
    %c0_8 = arith.constant 0 : index
    %c0_9 = arith.constant 0 : index
    %14 = vector.load %arg4[%c0_8, %c0_9] : memref<1x128xf32, #tpu.memory_space<vmem>>, vector<1x128xf32>
    %15 = vector.broadcast %14 : vector<1x128xf32> to vector<12x128xf32>
    %16 = arith.addf %13, %15 : vector<12x128xf32>
    %cst_10 = arith.constant 0.000000e+00 : f32
    %17 = vector.broadcast %cst_10 : f32 to vector<12x128xf32>
    %18 = arith.maximumf %16, %17 : vector<12x128xf32>
    %19 = vector.extract_strided_slice %1 {offsets = [2, 0, 0], sizes = [1, 12, 140], strides = [1, 1, 1]} : vector<4x12x140xf32> to vector<1x12x140xf32>
    %20 = vector.shape_cast %19 : vector<1x12x140xf32> to vector<12x140xf32>
    %c0_11 = arith.constant 0 : index
    %c0_12 = arith.constant 0 : index
    %21 = vector.load %arg2[%c0_11, %c0_12] : memref<140x256xf32, #tpu.memory_space<vmem>>, vector<140x256xf32>
    %cst_13 = arith.constant dense<0.000000e+00> : vector<12x256xf32>
    %22 = tpu.matmul %20, %21, %cst_13 {dimension_numbers = #tpu.dot_dimension_numbers<[1], [0], [0], [1], [0, 0, 1, 1], [], []>} : vector<12x140xf32>, vector<140x256xf32>, vector<12x256xf32> -> vector<12x256xf32>
    %23 = vector.extract_strided_slice %1 {offsets = [3, 0, 0], sizes = [1, 12, 140], strides = [1, 1, 1]} : vector<4x12x140xf32> to vector<1x12x140xf32>
    %24 = vector.shape_cast %23 : vector<1x12x140xf32> to vector<12x140xf32>
    %c0_14 = arith.constant 0 : index
    %c0_15 = arith.constant 0 : index
    %25 = vector.load %arg2[%c0_14, %c0_15] : memref<140x256xf32, #tpu.memory_space<vmem>>, vector<140x256xf32>
    %cst_16 = arith.constant dense<0.000000e+00> : vector<12x256xf32>
    %26 = tpu.matmul %24, %25, %cst_16 {dimension_numbers = #tpu.dot_dimension_numbers<[1], [0], [0], [1], [0, 0, 1, 1], [], []>} : vector<12x140xf32>, vector<140x256xf32>, vector<12x256xf32> -> vector<12x256xf32>
    %27 = arith.maximumf %22, %26 : vector<12x256xf32>
    %28 = vector.extract_strided_slice %27 {offsets = [0, 0], sizes = [12, 128], strides = [1, 1]} : vector<12x256xf32> to vector<12x128xf32>
    %29 = vector.extract_strided_slice %27 {offsets = [0, 128], sizes = [12, 128], strides = [1, 1]} : vector<12x256xf32> to vector<12x128xf32>
    %30 = arith.maximumf %28, %29 : vector<12x128xf32>
    %c0_17 = arith.constant 0 : index
    %c0_18 = arith.constant 0 : index
    %31 = vector.load %arg4[%c0_17, %c0_18] : memref<1x128xf32, #tpu.memory_space<vmem>>, vector<1x128xf32>
    %32 = vector.broadcast %31 : vector<1x128xf32> to vector<12x128xf32>
    %33 = arith.addf %30, %32 : vector<12x128xf32>
    %cst_19 = arith.constant 0.000000e+00 : f32
    %34 = vector.broadcast %cst_19 : f32 to vector<12x128xf32>
    %35 = arith.maximumf %33, %34 : vector<12x128xf32>
    %36 = vector.extract_strided_slice %18 {offsets = [0, 0], sizes = [8, 128], strides = [1, 1]} : vector<12x128xf32> to vector<8x128xf32>
    %c0_20 = arith.constant 0 : index
    %c0_21 = arith.constant 0 : index
    %c0_22 = arith.constant 0 : index
    %37 = vector.load %arg3[%c0_20, %c0_21, %c0_22] : memref<5x128x256xf32, #tpu.memory_space<vmem>>, vector<1x128x256xf32>
    %38 = vector.shape_cast %37 : vector<1x128x256xf32> to vector<128x256xf32>
    %cst_23 = arith.constant dense<0.000000e+00> : vector<8x256xf32>
    %39 = tpu.matmul %36, %38, %cst_23 {dimension_numbers = #tpu.dot_dimension_numbers<[1], [0], [0], [1], [0, 0, 1, 1], [], []>} : vector<8x128xf32>, vector<128x256xf32>, vector<8x256xf32> -> vector<8x256xf32>
    %40 = vector.extract_strided_slice %35 {offsets = [0, 0], sizes = [8, 128], strides = [1, 1]} : vector<12x128xf32> to vector<8x128xf32>
    %c1 = arith.constant 1 : index
    %c0_24 = arith.constant 0 : index
    %c0_25 = arith.constant 0 : index
    %41 = vector.load %arg3[%c1, %c0_24, %c0_25] : memref<5x128x256xf32, #tpu.memory_space<vmem>>, vector<1x128x256xf32>
    %42 = vector.shape_cast %41 : vector<1x128x256xf32> to vector<128x256xf32>
    %cst_26 = arith.constant dense<0.000000e+00> : vector<8x256xf32>
    %43 = tpu.matmul %40, %42, %cst_26 {dimension_numbers = #tpu.dot_dimension_numbers<[1], [0], [0], [1], [0, 0, 1, 1], [], []>} : vector<8x128xf32>, vector<128x256xf32>, vector<8x256xf32> -> vector<8x256xf32>
    %44 = arith.addf %39, %43 : vector<8x256xf32>
    %45 = vector.extract_strided_slice %18 {offsets = [2, 0], sizes = [8, 128], strides = [1, 1]} : vector<12x128xf32> to vector<8x128xf32>
    %c2 = arith.constant 2 : index
    %c0_27 = arith.constant 0 : index
    %c0_28 = arith.constant 0 : index
    %46 = vector.load %arg3[%c2, %c0_27, %c0_28] : memref<5x128x256xf32, #tpu.memory_space<vmem>>, vector<1x128x256xf32>
    %47 = vector.shape_cast %46 : vector<1x128x256xf32> to vector<128x256xf32>
    %cst_29 = arith.constant dense<0.000000e+00> : vector<8x256xf32>
    %48 = tpu.matmul %45, %47, %cst_29 {dimension_numbers = #tpu.dot_dimension_numbers<[1], [0], [0], [1], [0, 0, 1, 1], [], []>} : vector<8x128xf32>, vector<128x256xf32>, vector<8x256xf32> -> vector<8x256xf32>
    %49 = arith.addf %44, %48 : vector<8x256xf32>
    %50 = vector.extract_strided_slice %35 {offsets = [2, 0], sizes = [8, 128], strides = [1, 1]} : vector<12x128xf32> to vector<8x128xf32>
    %c3 = arith.constant 3 : index
    %c0_30 = arith.constant 0 : index
    %c0_31 = arith.constant 0 : index
    %51 = vector.load %arg3[%c3, %c0_30, %c0_31] : memref<5x128x256xf32, #tpu.memory_space<vmem>>, vector<1x128x256xf32>
    %52 = vector.shape_cast %51 : vector<1x128x256xf32> to vector<128x256xf32>
    %cst_32 = arith.constant dense<0.000000e+00> : vector<8x256xf32>
    %53 = tpu.matmul %50, %52, %cst_32 {dimension_numbers = #tpu.dot_dimension_numbers<[1], [0], [0], [1], [0, 0, 1, 1], [], []>} : vector<8x128xf32>, vector<128x256xf32>, vector<8x256xf32> -> vector<8x256xf32>
    %54 = arith.addf %49, %53 : vector<8x256xf32>
    %55 = vector.extract_strided_slice %18 {offsets = [4, 0], sizes = [8, 128], strides = [1, 1]} : vector<12x128xf32> to vector<8x128xf32>
    %c4 = arith.constant 4 : index
    %c0_33 = arith.constant 0 : index
    %c0_34 = arith.constant 0 : index
    %56 = vector.load %arg3[%c4, %c0_33, %c0_34] : memref<5x128x256xf32, #tpu.memory_space<vmem>>, vector<1x128x256xf32>
    %57 = vector.shape_cast %56 : vector<1x128x256xf32> to vector<128x256xf32>
    %cst_35 = arith.constant dense<0.000000e+00> : vector<8x256xf32>
    %58 = tpu.matmul %55, %57, %cst_35 {dimension_numbers = #tpu.dot_dimension_numbers<[1], [0], [0], [1], [0, 0, 1, 1], [], []>} : vector<8x128xf32>, vector<128x256xf32>, vector<8x256xf32> -> vector<8x256xf32>
    %59 = arith.addf %54, %58 : vector<8x256xf32>
    %60 = vector.extract_strided_slice %35 {offsets = [0, 0], sizes = [8, 128], strides = [1, 1]} : vector<12x128xf32> to vector<8x128xf32>
    %c0_36 = arith.constant 0 : index
    %c0_37 = arith.constant 0 : index
    %c0_38 = arith.constant 0 : index
    %61 = vector.load %arg3[%c0_36, %c0_37, %c0_38] : memref<5x128x256xf32, #tpu.memory_space<vmem>>, vector<1x128x256xf32>
    %62 = vector.shape_cast %61 : vector<1x128x256xf32> to vector<128x256xf32>
    %cst_39 = arith.constant dense<0.000000e+00> : vector<8x256xf32>
    %63 = tpu.matmul %60, %62, %cst_39 {dimension_numbers = #tpu.dot_dimension_numbers<[1], [0], [0], [1], [0, 0, 1, 1], [], []>} : vector<8x128xf32>, vector<128x256xf32>, vector<8x256xf32> -> vector<8x256xf32>
    %64 = vector.extract_strided_slice %18 {offsets = [2, 0], sizes = [8, 128], strides = [1, 1]} : vector<12x128xf32> to vector<8x128xf32>
    %c1_40 = arith.constant 1 : index
    %c0_41 = arith.constant 0 : index
    %c0_42 = arith.constant 0 : index
    %65 = vector.load %arg3[%c1_40, %c0_41, %c0_42] : memref<5x128x256xf32, #tpu.memory_space<vmem>>, vector<1x128x256xf32>
    %66 = vector.shape_cast %65 : vector<1x128x256xf32> to vector<128x256xf32>
    %cst_43 = arith.constant dense<0.000000e+00> : vector<8x256xf32>
    %67 = tpu.matmul %64, %66, %cst_43 {dimension_numbers = #tpu.dot_dimension_numbers<[1], [0], [0], [1], [0, 0, 1, 1], [], []>} : vector<8x128xf32>, vector<128x256xf32>, vector<8x256xf32> -> vector<8x256xf32>
    %68 = arith.addf %63, %67 : vector<8x256xf32>
    %69 = vector.extract_strided_slice %35 {offsets = [2, 0], sizes = [8, 128], strides = [1, 1]} : vector<12x128xf32> to vector<8x128xf32>
    %c2_44 = arith.constant 2 : index
    %c0_45 = arith.constant 0 : index
    %c0_46 = arith.constant 0 : index
    %70 = vector.load %arg3[%c2_44, %c0_45, %c0_46] : memref<5x128x256xf32, #tpu.memory_space<vmem>>, vector<1x128x256xf32>
    %71 = vector.shape_cast %70 : vector<1x128x256xf32> to vector<128x256xf32>
    %cst_47 = arith.constant dense<0.000000e+00> : vector<8x256xf32>
    %72 = tpu.matmul %69, %71, %cst_47 {dimension_numbers = #tpu.dot_dimension_numbers<[1], [0], [0], [1], [0, 0, 1, 1], [], []>} : vector<8x128xf32>, vector<128x256xf32>, vector<8x256xf32> -> vector<8x256xf32>
    %73 = arith.addf %68, %72 : vector<8x256xf32>
    %74 = vector.extract_strided_slice %18 {offsets = [4, 0], sizes = [8, 128], strides = [1, 1]} : vector<12x128xf32> to vector<8x128xf32>
    %c3_48 = arith.constant 3 : index
    %c0_49 = arith.constant 0 : index
    %c0_50 = arith.constant 0 : index
    %75 = vector.load %arg3[%c3_48, %c0_49, %c0_50] : memref<5x128x256xf32, #tpu.memory_space<vmem>>, vector<1x128x256xf32>
    %76 = vector.shape_cast %75 : vector<1x128x256xf32> to vector<128x256xf32>
    %cst_51 = arith.constant dense<0.000000e+00> : vector<8x256xf32>
    %77 = tpu.matmul %74, %76, %cst_51 {dimension_numbers = #tpu.dot_dimension_numbers<[1], [0], [0], [1], [0, 0, 1, 1], [], []>} : vector<8x128xf32>, vector<128x256xf32>, vector<8x256xf32> -> vector<8x256xf32>
    %78 = arith.addf %73, %77 : vector<8x256xf32>
    %79 = vector.extract_strided_slice %35 {offsets = [4, 0], sizes = [8, 128], strides = [1, 1]} : vector<12x128xf32> to vector<8x128xf32>
    %c4_52 = arith.constant 4 : index
    %c0_53 = arith.constant 0 : index
    %c0_54 = arith.constant 0 : index
    %80 = vector.load %arg3[%c4_52, %c0_53, %c0_54] : memref<5x128x256xf32, #tpu.memory_space<vmem>>, vector<1x128x256xf32>
    %81 = vector.shape_cast %80 : vector<1x128x256xf32> to vector<128x256xf32>
    %cst_55 = arith.constant dense<0.000000e+00> : vector<8x256xf32>
    %82 = tpu.matmul %79, %81, %cst_55 {dimension_numbers = #tpu.dot_dimension_numbers<[1], [0], [0], [1], [0, 0, 1, 1], [], []>} : vector<8x128xf32>, vector<128x256xf32>, vector<8x256xf32> -> vector<8x256xf32>
    %83 = arith.addf %78, %82 : vector<8x256xf32>
    %84 = arith.maximumf %59, %83 : vector<8x256xf32>
    %85 = vector.extract_strided_slice %84 {offsets = [0, 0], sizes = [8, 128], strides = [1, 1]} : vector<8x256xf32> to vector<8x128xf32>
    %86 = vector.extract_strided_slice %84 {offsets = [0, 128], sizes = [8, 128], strides = [1, 1]} : vector<8x256xf32> to vector<8x128xf32>
    %87 = arith.maximumf %85, %86 : vector<8x128xf32>
    %c0_56 = arith.constant 0 : index
    %c0_57 = arith.constant 0 : index
    %88 = vector.load %arg5[%c0_56, %c0_57] : memref<1x128xf32, #tpu.memory_space<vmem>>, vector<1x128xf32>
    %89 = vector.broadcast %88 : vector<1x128xf32> to vector<8x128xf32>
    %90 = arith.addf %87, %89 : vector<8x128xf32>
    %cst_58 = arith.constant 0.000000e+00 : f32
    %91 = vector.broadcast %cst_58 : f32 to vector<8x128xf32>
    %92 = arith.maximumf %90, %91 : vector<8x128xf32>
    %93 = vector.extract_strided_slice %92 {offsets = [0, 0], sizes = [2, 128], strides = [1, 1]} : vector<8x128xf32> to vector<2x128xf32>
    %c0_59 = arith.constant 0 : index
    %c0_60 = arith.constant 0 : index
    %c0_61 = arith.constant 0 : index
    %94 = vector.load %arg6[%c0_59, %c0_60, %c0_61] : memref<4x128x128xf32, #tpu.memory_space<vmem>>, vector<1x128x128xf32>
    %95 = vector.shape_cast %94 : vector<1x128x128xf32> to vector<128x128xf32>
    %cst_62 = arith.constant dense<0.000000e+00> : vector<2x128xf32>
    %96 = tpu.matmul %93, %95, %cst_62 {dimension_numbers = #tpu.dot_dimension_numbers<[1], [0], [0], [1], [0, 0, 1, 1], [], []>} : vector<2x128xf32>, vector<128x128xf32>, vector<2x128xf32> -> vector<2x128xf32>
    %97 = vector.extract_strided_slice %92 {offsets = [2, 0], sizes = [2, 128], strides = [1, 1]} : vector<8x128xf32> to vector<2x128xf32>
    %c1_63 = arith.constant 1 : index
    %c0_64 = arith.constant 0 : index
    %c0_65 = arith.constant 0 : index
    %98 = vector.load %arg6[%c1_63, %c0_64, %c0_65] : memref<4x128x128xf32, #tpu.memory_space<vmem>>, vector<1x128x128xf32>
    %99 = vector.shape_cast %98 : vector<1x128x128xf32> to vector<128x128xf32>
    %cst_66 = arith.constant dense<0.000000e+00> : vector<2x128xf32>
    %100 = tpu.matmul %97, %99, %cst_66 {dimension_numbers = #tpu.dot_dimension_numbers<[1], [0], [0], [1], [0, 0, 1, 1], [], []>} : vector<2x128xf32>, vector<128x128xf32>, vector<2x128xf32> -> vector<2x128xf32>
    %101 = arith.addf %96, %100 : vector<2x128xf32>
    %102 = vector.extract_strided_slice %92 {offsets = [4, 0], sizes = [2, 128], strides = [1, 1]} : vector<8x128xf32> to vector<2x128xf32>
    %c2_67 = arith.constant 2 : index
    %c0_68 = arith.constant 0 : index
    %c0_69 = arith.constant 0 : index
    %103 = vector.load %arg6[%c2_67, %c0_68, %c0_69] : memref<4x128x128xf32, #tpu.memory_space<vmem>>, vector<1x128x128xf32>
    %104 = vector.shape_cast %103 : vector<1x128x128xf32> to vector<128x128xf32>
    %cst_70 = arith.constant dense<0.000000e+00> : vector<2x128xf32>
    %105 = tpu.matmul %102, %104, %cst_70 {dimension_numbers = #tpu.dot_dimension_numbers<[1], [0], [0], [1], [0, 0, 1, 1], [], []>} : vector<2x128xf32>, vector<128x128xf32>, vector<2x128xf32> -> vector<2x128xf32>
    %106 = arith.addf %101, %105 : vector<2x128xf32>
    %107 = vector.extract_strided_slice %92 {offsets = [6, 0], sizes = [2, 128], strides = [1, 1]} : vector<8x128xf32> to vector<2x128xf32>
    %c3_71 = arith.constant 3 : index
    %c0_72 = arith.constant 0 : index
    %c0_73 = arith.constant 0 : index
    %108 = vector.load %arg6[%c3_71, %c0_72, %c0_73] : memref<4x128x128xf32, #tpu.memory_space<vmem>>, vector<1x128x128xf32>
    %109 = vector.shape_cast %108 : vector<1x128x128xf32> to vector<128x128xf32>
    %cst_74 = arith.constant dense<0.000000e+00> : vector<2x128xf32>
    %110 = tpu.matmul %107, %109, %cst_74 {dimension_numbers = #tpu.dot_dimension_numbers<[1], [0], [0], [1], [0, 0, 1, 1], [], []>} : vector<2x128xf32>, vector<128x128xf32>, vector<2x128xf32> -> vector<2x128xf32>
    %111 = arith.addf %106, %110 : vector<2x128xf32>
    %c0_75 = arith.constant 0 : index
    %c0_76 = arith.constant 0 : index
    %112 = vector.load %arg7[%c0_75, %c0_76] : memref<1x128xf32, #tpu.memory_space<vmem>>, vector<1x128xf32>
    %113 = vector.broadcast %112 : vector<1x128xf32> to vector<2x128xf32>
    %114 = arith.addf %111, %113 : vector<2x128xf32>
    %cst_77 = arith.constant 0.000000e+00 : f32
    %115 = vector.broadcast %cst_77 : f32 to vector<2x128xf32>
    %116 = arith.maximumf %114, %115 : vector<2x128xf32>
    %c0_78 = arith.constant 0 : index
    %c0_79 = arith.constant 0 : index
    %117 = vector.load %arg8[%c0_78, %c0_79] : memref<128x128xf32, #tpu.memory_space<vmem>>, vector<128x128xf32>
    %cst_80 = arith.constant dense<0.000000e+00> : vector<2x128xf32>
    %118 = tpu.matmul %116, %117, %cst_80 {dimension_numbers = #tpu.dot_dimension_numbers<[1], [0], [0], [1], [0, 0, 1, 1], [], []>} : vector<2x128xf32>, vector<128x128xf32>, vector<2x128xf32> -> vector<2x128xf32>
    %c0_81 = arith.constant 0 : index
    %c0_82 = arith.constant 0 : index
    %119 = vector.load %arg9[%c0_81, %c0_82] : memref<1x128xf32, #tpu.memory_space<vmem>>, vector<1x128xf32>
    %120 = vector.broadcast %119 : vector<1x128xf32> to vector<2x128xf32>
    %121 = arith.addf %118, %120 : vector<2x128xf32>
    %cst_83 = arith.constant 0.000000e+00 : f32
    %122 = vector.broadcast %cst_83 : f32 to vector<2x128xf32>
    %123 = arith.maximumf %121, %122 : vector<2x128xf32>
    %c0_84 = arith.constant 0 : index
    %c0_85 = arith.constant 0 : index
    %124 = vector.load %arg10[%c0_84, %c0_85] : memref<128x128xf32, #tpu.memory_space<vmem>>, vector<128x128xf32>
    %cst_86 = arith.constant dense<0.000000e+00> : vector<2x128xf32>
    %125 = tpu.matmul %123, %124, %cst_86 {dimension_numbers = #tpu.dot_dimension_numbers<[1], [0], [0], [1], [0, 0, 1, 1], [], []>} : vector<2x128xf32>, vector<128x128xf32>, vector<2x128xf32> -> vector<2x128xf32>
    %c0_87 = arith.constant 0 : index
    %c0_88 = arith.constant 0 : index
    %126 = vector.load %arg11[%c0_87, %c0_88] : memref<1x128xf32, #tpu.memory_space<vmem>>, vector<1x128xf32>
    %127 = vector.broadcast %126 : vector<1x128xf32> to vector<2x128xf32>
    %128 = arith.addf %125, %127 : vector<2x128xf32>
    %c0_89 = arith.constant 0 : index
    %c0_90 = arith.constant 0 : index
    %c0_91 = arith.constant 0 : index
    %129 = vector.load %arg12[%c0_89, %c0_90, %c0_91] : memref<1x2x128xf32, #tpu.memory_space<vmem>>, vector<1x2x128xf32>
    %130 = vector.shape_cast %129 : vector<1x2x128xf32> to vector<2x128xf32>
    %131 = vector.shape_cast %128 : vector<2x128xf32> to vector<1x2x128xf32>
    tpu.vector_store %arg12[%c0_89, %c0_90, %c0_91], %131 {strides = array<i32>} : memref<1x2x128xf32, #tpu.memory_space<vmem>>, vector<1x2x128xf32>,
    return
  }
  func.func @transform_0(%arg0: i32) -> (i32, i32, i32, i32) {
    %c0_i32 = arith.constant 0 : i32
    %c0_i32_0 = arith.constant 0 : i32
    %c0_i32_1 = arith.constant 0 : i32
    %c0_i32_2 = arith.constant 0 : i32
    return %arg0, %c0_i32, %c0_i32_0, %c0_i32_1 : i32, i32, i32, i32
  }
  func.func @transform_1(%arg0: i32) -> (i32, i32) {
    %c0_i32 = arith.constant 0 : i32
    %c0_i32_0 = arith.constant 0 : i32
    %c0_i32_1 = arith.constant 0 : i32
    return %c0_i32, %c0_i32_0 : i32, i32
  }
  func.func @transform_2(%arg0: i32) -> (i32, i32, i32) {
    %c0_i32 = arith.constant 0 : i32
    %c0_i32_0 = arith.constant 0 : i32
    %c0_i32_1 = arith.constant 0 : i32
    %c0_i32_2 = arith.constant 0 : i32
    return %c0_i32, %c0_i32_0, %c0_i32_1 : i32, i32, i32
  }
  func.func @transform_3(%arg0: i32) -> (i32, i32) {
    %c0_i32 = arith.constant 0 : i32
    %c0_i32_0 = arith.constant 0 : i32
    %c0_i32_1 = arith.constant 0 : i32
    return %c0_i32, %c0_i32_0 : i32, i32
  }
  func.func @transform_4(%arg0: i32) -> (i32, i32) {
    %c0_i32 = arith.constant 0 : i32
    %c0_i32_0 = arith.constant 0 : i32
    %c0_i32_1 = arith.constant 0 : i32
    return %c0_i32, %c0_i32_0 : i32, i32
  }
  func.func @transform_5(%arg0: i32) -> (i32, i32, i32) {
    %c0_i32 = arith.constant 0 : i32
    %c0_i32_0 = arith.constant 0 : i32
    %c0_i32_1 = arith.constant 0 : i32
    %c0_i32_2 = arith.constant 0 : i32
    return %c0_i32, %c0_i32_0, %c0_i32_1 : i32, i32, i32
  }
  func.func @transform_6(%arg0: i32) -> (i32, i32) {
    %c0_i32 = arith.constant 0 : i32
    %c0_i32_0 = arith.constant 0 : i32
    %c0_i32_1 = arith.constant 0 : i32
    return %c0_i32, %c0_i32_0 : i32, i32
  }
  func.func @transform_7(%arg0: i32) -> (i32, i32) {
    %c0_i32 = arith.constant 0 : i32
    %c0_i32_0 = arith.constant 0 : i32
    %c0_i32_1 = arith.constant 0 : i32
    return %c0_i32, %c0_i32_0 : i32, i32
  }
  func.func @transform_8(%arg0: i32) -> (i32, i32) {
    %c0_i32 = arith.constant 0 : i32
    %c0_i32_0 = arith.constant 0 : i32
    %c0_i32_1 = arith.constant 0 : i32
    return %c0_i32, %c0_i32_0 : i32, i32
  }
  func.func @transform_9(%arg0: i32) -> (i32, i32) {
    %c0_i32 = arith.constant 0 : i32
    %c0_i32_0 = arith.constant 0 : i32
    %c0_i32_1 = arith.constant 0 : i32
    return %c0_i32, %c0_i32_0 : i32, i32
  }
  func.func @transform_10(%arg0: i32) -> (i32, i32) {
    %c0_i32 = arith.constant 0 : i32
    %c0_i32_0 = arith.constant 0 : i32
    %c0_i32_1 = arith.constant 0 : i32
    return %c0_i32, %c0_i32_0 : i32, i32
  }
  func.func @transform_11(%arg0: i32) -> (i32, i32, i32) {
    %c0_i32 = arith.constant 0 : i32
    %c0_i32_0 = arith.constant 0 : i32
    %c0_i32_1 = arith.constant 0 : i32
    return %arg0, %c0_i32, %c0_i32_0 : i32, i32, i32
  }
}

</mosaic_0001>

<bundles_post_ra>
// kernel: cnn_v1_forward.1
= control target key start
LH: loop header
LB: loop body
LE: loop exit
PB: predicated region body
PF: predicated region fallthrough
CT: control target
= control target key end

     0   :  { %s4514_s0 = inlined_call_operand.vmem [shape: f32[1,4,12,140], index: 0, kind: input, shape index: {}]   ;;  %s4515_s1 = inlined_call_operand.vmem [shape: f32[140,256], index: 1, kind: input, shape index: {}]   ;;  %s4516_s2 = inlined_call_operand.vmem [shape: f32[5,128,256], index: 2, kind: input, shape index: {}]   ;;  %s4517_s3 = inlined_call_operand.vmem [shape: f32[1,128], index: 3, kind: input, shape index: {}]   ;;  %s4518_s4 = inlined_call_operand.vmem [shape: f32[1,128], index: 4, kind: input, shape index: {}]   ;;  %s4519_s5 = inlined_call_operand.vmem [shape: f32[4,128,128], index: 5, kind: input, shape index: {}]   ;;  %s4520_s6 = inlined_call_operand.vmem [shape: f32[1,128], index: 6, kind: input, shape index: {}]   ;;  %s4521_s7 = inlined_call_operand.vmem [shape: f32[128,128], index: 7, kind: input, shape index: {}]   ;;  %s4522_s8 = inlined_call_operand.vmem [shape: f32[1,128], index: 8, kind: input, shape index: {}]   ;;  %s4523_s9 = inlined_call_operand.vmem [shape: f32[128,128], index: 9, kind: input, shape index: {}]   ;;  %s4524_s10 = inlined_call_operand.vmem [shape: f32[1,128], index: 10, kind: input, shape index: {}]   ;;  %s4525_s11 = inlined_call_operand.hbm [shape: f32[1,2,128], index: 11, kind: output, shape index: {}]  }
   0x1   :  { %v2544_v0 = vld [vmem:[%s4515_s1 + $0xf8] sm:$0xff]  ;;  %v2549_v1 = vld [vmem:[%s4515_s1 + $0xf0] sm:$0xff]  ;;  %v2554_v2 = vld [vmem:[%s4515_s1 + $0xe8] sm:$0xff] }
   0x2   :  { %105 = vmatprep.subr.mxu0 %v2544_v0  ;;  %188 = vmatprep.subr.mxu1 %v2544_v0  ;;  %v2561_v3 = vld [vmem:[%s4515_s1 + $0xe0] sm:$0xff]  ;;  %v2568_v4 = vld [vmem:[%s4515_s1 + $0xd8] sm:$0xff]  ;;  %v2575_v5 = vld [vmem:[%s4515_s1 + $0xd0] sm:$0xff] }
   0x3   :  { %106 = vmatpush1.msra.mxu0 %v2549_v1  ;;  %189 = vmatpush1.msra.mxu1 %v2549_v1  ;;  %v2582_v6 = vld [vmem:[%s4515_s1 + $0xc8] sm:$0xff]  ;;  %v2589_v7 = vld [vmem:[%s4515_s1 + $0xc0] sm:$0xff]  ;;  %v2596_v8 = vld [vmem:[%s4515_s1 + $0xb8] sm:$0xff] }
   0x4   :  { %107 = vmatprep.subr.mxu0 %v2554_v2  ;;  %190 = vmatprep.subr.mxu1 %v2554_v2  ;;  %v2603_v9 = vld [vmem:[%s4515_s1 + $0xb0] sm:$0xff]  ;;  %v2610_v10 = vld [vmem:[%s4515_s1 + $0xa8] sm:$0xff]  ;;  %v2617_v11 = vld [vmem:[%s4515_s1 + $0xa0] sm:$0xff] }
   0x5   :  { %108 = vmatpush1.msra.mxu0 %v2561_v3  ;;  %191 = vmatpush1.msra.mxu1 %v2561_v3  ;;  %v2624_v12 = vld [vmem:[%s4515_s1 + $0x98] sm:$0xff]  ;;  %v2631_v13 = vld [vmem:[%s4515_s1 + $0x90] sm:$0xff]  ;;  %v2638_v14 = vld [vmem:[%s4515_s1 + $0x88] sm:$0xff] }
   0x6   :  { %109 = vmatprep.subr.mxu0 %v2568_v4  ;;  %192 = vmatprep.subr.mxu1 %v2568_v4  ;;  %v2645_v15 = vld [vmem:[%s4515_s1 + $0x80] sm:$0xff]  ;;  %v2652_v16 = vld [vmem:[%s4515_s1 + $0x78] sm:$0xff]  ;;  %v2659_v17 = vld [vmem:[%s4515_s1 + $0x70] sm:$0xff] }
   0x7   :  { %110 = vmatpush1.msra.mxu0 %v2575_v5  ;;  %193 = vmatpush1.msra.mxu1 %v2575_v5  ;;  %v2666_v18 = vld [vmem:[%s4515_s1 + $0x68] sm:$0xff]  ;;  %v2673_v19 = vld [vmem:[%s4515_s1 + $0x60] sm:$0xff]  ;;  %v2680_v20 = vld [vmem:[%s4515_s1 + $0x58] sm:$0xff] }
   0x8   :  { %111 = vmatprep.subr.mxu0 %v2582_v6  ;;  %194 = vmatprep.subr.mxu1 %v2582_v6  ;;  %v2687_v21 = vld [vmem:[%s4515_s1 + $0x50] sm:$0xff]  ;;  %v2694_v22 = vld [vmem:[%s4515_s1 + $0x48] sm:$0xff]  ;;  %v2701_v23 = vld [vmem:[%s4515_s1 + $0x40] sm:$0xff] }
   0x9   :  { %112 = vmatpush1.msra.mxu0 %v2589_v7  ;;  %195 = vmatpush1.msra.mxu1 %v2589_v7  ;;  %v2708_v24 = vld [vmem:[%s4515_s1 + $0x38] sm:$0xff]  ;;  %v2715_v25 = vld [vmem:[%s4515_s1 + $0x30] sm:$0xff]  ;;  %v2722_v26 = vld [vmem:[%s4515_s1 + $0x28] sm:$0xff] }
   0xa   :  { %113 = vmatprep.subr.mxu0 %v2596_v8  ;;  %196 = vmatprep.subr.mxu1 %v2596_v8 }
   0xb   :  { %114 = vmatpush1.msra.mxu0 %v2603_v9  ;;  %197 = vmatpush1.msra.mxu1 %v2603_v9 }
   0xc   :  { %115 = vmatprep.subr.mxu0 %v2610_v10  ;;  %198 = vmatprep.subr.mxu1 %v2610_v10 }
   0xd   :  { %116 = vmatpush1.msra.mxu0 %v2617_v11  ;;  %199 = vmatpush1.msra.mxu1 %v2617_v11 }
   0xe   :  { %117 = vmatprep.subr.mxu0 %v2624_v12  ;;  %200 = vmatprep.subr.mxu1 %v2624_v12 }
   0xf   :  { %118 = vmatpush1.msra.mxu0 %v2631_v13  ;;  %201 = vmatpush1.msra.mxu1 %v2631_v13 }
  0x10   :  { %119 = vmatprep.subr.mxu0 %v2638_v14  ;;  %202 = vmatprep.subr.mxu1 %v2638_v14 }
  0x11   :  { %120 = vmatpush1.msra.mxu0 %v2645_v15  ;;  %203 = vmatpush1.msra.mxu1 %v2645_v15 }
  0x12   :  { %121 = vmatprep.subr.mxu0 %v2652_v16  ;;  %204 = vmatprep.subr.mxu1 %v2652_v16 }
  0x13   :  { %122 = vmatpush1.msra.mxu0 %v2659_v17  ;;  %205 = vmatpush1.msra.mxu1 %v2659_v17 }
  0x14   :  { %123 = vmatprep.subr.mxu0 %v2666_v18  ;;  %206 = vmatprep.subr.mxu1 %v2666_v18 }
  0x15   :  { %124 = vmatpush1.msra.mxu0 %v2673_v19  ;;  %207 = vmatpush1.msra.mxu1 %v2673_v19 }
  0x16   :  { %125 = vmatprep.subr.mxu0 %v2680_v20  ;;  %208 = vmatprep.subr.mxu1 %v2680_v20 }
  0x17   :  { %126 = vmatpush1.msra.mxu0 %v2687_v21  ;;  %209 = vmatpush1.msra.mxu1 %v2687_v21 }
  0x18   :  { %127 = vmatprep.subr.mxu0 %v2694_v22  ;;  %210 = vmatprep.subr.mxu1 %v2694_v22 }
  0x19   :  { %128 = vmatpush1.msra.mxu0 %v2701_v23  ;;  %211 = vmatpush1.msra.mxu1 %v2701_v23 }
  0x1a   :  { %16 = vsyncpa [#allocation3], 0  ;;  %129 = vmatprep.subr.mxu0 %v2708_v24  ;;  %212 = vmatprep.subr.mxu1 %v2708_v24  ;;  %v2729_v27 = vld [vmem:[%s4515_s1 + $0x20] sm:$0xff]  ;;  %v2736_v28 = vld [vmem:[%s4515_s1 + $0x18] sm:$0xff]  ;;  %vm98_vm0 = vcmask 1043456   ;;  %vm91_vm1 = vcmask 97280  }
  0x1b   :  { %130 = vmatpush1.msra.mxu0 %v2715_v25  ;;  %213 = vmatpush1.msra.mxu1 %v2715_v25  ;;  %v2743_v29 = vld [vmem:[%s4515_s1 + $0x10] sm:$0xff]  ;;  %v2750_v30 = vld [vmem:[%s4515_s1 + $0x8] sm:$0xff]  ;;  %v2757_v31 = vld [vmem:[%s4515_s1] sm:$0xff]  ;;  %vm700_vm2 = vcmask 1045504   ;;  %vm2479_vm3 = vmmov 0   ;;  %s2480_s25 = smov [#allocation2]  }
  0x1c   :  { %131 = vmatprep.subr.mxu0 %v2722_v26  ;;  %214 = vmatprep.subr.mxu1 %v2722_v26  ;;  %v2764_v32 = vld [vmem:[%s4515_s1 + $0x118] sm:$0xf]  ;;  %v2771_v33 = vld [vmem:[%s4515_s1 + $0x110] sm:$0xf]  ;;  %v2778_v34 = vld [vmem:[%s4515_s1 + $0x108] sm:$0xff]  ;;  %s1936_s26 = sshll.u32 %s2480_s25, 4  ;;  %s1937_s26 = int_to_ptr.vmem [resolvable:$true] %s1936_s26 }
  0x1d   :  { %132 = vmatpush1.msra.mxu0 %v2729_v27  ;;  %215 = vmatpush1.msra.mxu1 %v2729_v27  ;;  %v2787_v35 = vld [vmem:[%s4515_s1 + $0x100] sm:$0xff]  ;;  %v40_v36 = vld [vmem:[%s4514_s0 + $0x8] sm:$0xff]  ;;  %v42_v40 = vld [vmem:[%s4514_s0 + $0x18] sm:$0xf]  ;;  %p2461_p1 = scmp.lt.s32.totalorder %s1937_s26, %s1937_s26 }
  0x1e   :  { %133 = vmatprep.subr.mxu0 %v2736_v28  ;;  %216 = vmatprep.subr.mxu1 %v2736_v28  ;;  %v44_v37 = vld [vmem:[%s4514_s0 + $0x28] sm:$0xff]  ;;  %v39_v38 = vld [vmem:[%s4514_s0] sm:$0xff]  ;;  %v46_v41 = vld [vmem:[%s4514_s0 + $0x38] sm:$0xf] }
  0x1f   :  { %134 = vmatpush1.msra.mxu0 %v2743_v29  ;;  %217 = vmatpush1.msra.mxu1 %v2743_v29  ;;  %v43_v39 = vld [vmem:[%s4514_s0 + $0x20] sm:$0xff]  ;;  %v41_v42 = vld [vmem:[%s4514_s0 + $0x10] sm:$0xf]  ;;  %v48_v44 = vld [vmem:[%s4514_s0 + $0x48] sm:$0xff] }
  0x20   :  { %135 = vmatprep.subr.mxu0 %v2750_v30  ;;  %218 = vmatprep.subr.mxu1 %v2750_v30  ;;  %v45_v43 = vld [vmem:[%s4514_s0 + $0x30] sm:$0xf]  ;;  %v52_v45 = vld [vmem:[%s4514_s0 + $0x68] sm:$0xff]  ;;  %v47_v46 = vld [vmem:[%s4514_s0 + $0x40] sm:$0xff] }
  0x21   :  { %136 = vmatpush1.msra.mxu0 %v2757_v31  ;;  %219 = vmatpush1.msra.mxu1 %v2757_v31  ;;  %v51_v47 = vld [vmem:[%s4514_s0 + $0x60] sm:$0xff]  ;;  %v50_v48 = vld [vmem:[%s4514_s0 + $0x58] sm:$0xf]  ;;  %v2929_v51 = vld [vmem:[%s4516_s2 + $0xf0] sm:$0xff] }
  0x22   :  { %1944 = vmatprep.subr.msk.mxu0 %vm98_vm0, %v2764_v32  ;;  %1948 = vmatprep.subr.msk.mxu1 %vm98_vm0, %v2764_v32  ;;  %v54_v49 = vld [vmem:[%s4514_s0 + $0x78] sm:$0xf]  ;;  %v49_v52 = vld [vmem:[%s4514_s0 + $0x50] sm:$0xf]  ;;  %v2943_v54 = vld [vmem:[%s4516_s2 + $0xe8] sm:$0xff] }
  0x23   :  { %1945 = vmatpush2.msk.msra.mxu0 %vm98_vm0, %v2771_v33  ;;  %1949 = vmatpush2.msk.msra.mxu1 %vm98_vm0, %v2771_v33  ;;  %v2924_v50 = vld [vmem:[%s4516_s2 + $0xf8] sm:$0xff]  ;;  %v53_v53 = vld [vmem:[%s4514_s0 + $0x70] sm:$0xf]  ;;  %v2949_v55 = vld [vmem:[%s4516_s2 + $0xe0] sm:$0xff] }
  0x24   :  { %167 = vmatprep.subr.mxu0 %v2778_v34  ;;  %250 = vmatprep.subr.mxu1 %v2778_v34  ;;  %v2954_v56 = vld [vmem:[%s4516_s2 + $0xd8] sm:$0xff]  ;;  %v2960_v57 = vld [vmem:[%s4516_s2 + $0xd0] sm:$0xff]  ;;  %v2966_v58 = vld [vmem:[%s4516_s2 + $0xc8] sm:$0xff] }
  0x25   :  { %168 = vmatpush2.msra.mxu0 %v2787_v35  ;;  %1946 = vmatprep.mubr.msk.f32.mxu0 %vm91_vm1, %v40_v36  ;;  %v2972_v59 = vld [vmem:[%s4516_s2 + $0xc0] sm:$0xff]  ;;  %v2978_v60 = vld [vmem:[%s4516_s2 + $0xb8] sm:$0xff]  ;;  %v2984_v61 = vld [vmem:[%s4516_s2 + $0xb0] sm:$0xff] }
  0x26   :  { %251 = vmatpush2.msra.mxu1 %v2787_v35  ;;  %1950 = vmatprep.mubr.msk.f32.mxu1 %vm91_vm1, %v44_v37  ;;  %v2990_v62 = vld [vmem:[%s4516_s2 + $0xa8] sm:$0xff]  ;;  %v2996_v63 = vld [vmem:[%s4516_s2 + $0xa0] sm:$0xff] }
  0x27   :  { %170 = vmatmul.mubr.f32.vlgmr.msra.gmra.mxu0 %v39_v38  ;;  %253 = vmatmul.mubr.f32.vlgmr.msra.gmra.mxu1 %v43_v39  ;;  %4582 = vst [vmem:[#allocation5_spill] sm:$0xff] %v2990_v62  ;;  %4583 = vst [vmem:[#allocation6_spill] sm:$0xff] %v2996_v63  ;;  %v3214_v36 = vld [vmem:[%s4516_s2 + $0x188] sm:$0xff]  ;;  %v3220_v37 = vld [vmem:[%s4516_s2 + $0x180] sm:$0xff] }
  0x28   :  { %288 = vmatprep.subr.mxu0 %v2544_v0  ;;  %371 = vmatprep.subr.mxu1 %v2544_v0  ;;  %v3002_v0 = vld [vmem:[%s4516_s2 + $0x98] sm:$0xff]  ;;  %v3232_v39 = vld [vmem:[%s4516_s2 + $0x170] sm:$0xff] }
  0x29   :  { %289 = vmatpush1.msra.mxu0 %v2549_v1  ;;  %372 = vmatpush1.msra.mxu1 %v2549_v1  ;;  %4584 = vst [vmem:[#allocation7_spill] sm:$0xff] %v3002_v0  ;;  %v3008_v1 = vld [vmem:[%s4516_s2 + $0x90] sm:$0xff]  ;;  %v3226_v38 = vld [vmem:[%s4516_s2 + $0x178] sm:$0xff] }
  0x2a   :  { %290 = vmatprep.subr.mxu0 %v2554_v2  ;;  %373 = vmatprep.subr.mxu1 %v2554_v2  ;;  %4585 = vst [vmem:[#allocation8_spill] sm:$0xff] %v3008_v1  ;;  %v3014_v2 = vld [vmem:[%s4516_s2 + $0x88] sm:$0xff] }
  0x2b   :  { %1947 = vmatprep.mubr.msk.f32.mxu0 %vm91_vm1, %v42_v40  ;;  %1951 = vmatprep.mubr.msk.f32.mxu1 %vm91_vm1, %v46_v41  ;;  %4586 = vst [vmem:[#allocation9_spill] sm:$0xff] %v3014_v2  ;;  %v3238_v40 = vld [vmem:[%s4516_s2 + $0x168] sm:$0xff]  ;;  %v3244_v41 = vld [vmem:[%s4516_s2 + $0x160] sm:$0xff] }
  0x2c   :  { %291 = vmatpush1.msra.mxu0 %v2561_v3  ;;  %374 = vmatpush1.msra.mxu1 %v2561_v3  ;;  %v3020_v3 = vld [vmem:[%s4516_s2 + $0x80] sm:$0xff] }
  0x2d   :  { %176 = vmatmul.mubr.f32.gmra.mxu0 %v41_v42  ;;  %259 = vmatmul.mubr.f32.gmra.mxu1 %v45_v43  ;;  %4587 = vst [vmem:[#allocation10_spill] sm:$0xff] %v3020_v3  ;;  %v3250_v42 = vld [vmem:[%s4516_s2 + $0x158] sm:$0xff]  ;;  %v3256_v43 = vld [vmem:[%s4516_s2 + $0x150] sm:$0xff] }
  0x2e   :  { %292 = vmatprep.subr.mxu0 %v2568_v4  ;;  %375 = vmatprep.subr.mxu1 %v2568_v4  ;;  %v3026_v4 = vld [vmem:[%s4516_s2 + $0x78] sm:$0xff] }
  0x2f   :  { %293 = vmatpush1.msra.mxu0 %v2575_v5  ;;  %376 = vmatpush1.msra.mxu1 %v2575_v5  ;;  %4588 = vst [vmem:[#allocation11_spill] sm:$0xff] %v3026_v4  ;;  %v3032_v5 = vld [vmem:[%s4516_s2 + $0x70] sm:$0xff] }
  0x30   :  { %294 = vmatprep.subr.mxu0 %v2582_v6  ;;  %377 = vmatprep.subr.mxu1 %v2582_v6  ;;  %4589 = vst [vmem:[#allocation12_spill] sm:$0xff] %v3032_v5  ;;  %v3038_v6 = vld [vmem:[%s4516_s2 + $0x68] sm:$0xff] }
  0x31   :  { %295 = vmatpush1.msra.mxu0 %v2589_v7  ;;  %378 = vmatpush1.msra.mxu1 %v2589_v7  ;;  %4590 = vst [vmem:[#allocation13_spill] sm:$0xff] %v3038_v6  ;;  %v3044_v7 = vld [vmem:[%s4516_s2 + $0x60] sm:$0xff] }
  0x32   :  { %296 = vmatprep.subr.mxu0 %v2596_v8  ;;  %379 = vmatprep.subr.mxu1 %v2596_v8  ;;  %4591 = vst [vmem:[#allocation14_spill] sm:$0xff] %v3044_v7  ;;  %v3050_v8 = vld [vmem:[%s4516_s2 + $0x58] sm:$0xff] }
  0x33   :  { %297 = vmatpush1.msra.mxu0 %v2603_v9  ;;  %380 = vmatpush1.msra.mxu1 %v2603_v9  ;;  %4592 = vst [vmem:[#allocation15_spill] sm:$0xff] %v3050_v8  ;;  %v3058_v9 = vld [vmem:[%s4516_s2 + $0x50] sm:$0xff] }
  0x34   :  { %298 = vmatprep.subr.mxu0 %v2610_v10  ;;  %381 = vmatprep.subr.mxu1 %v2610_v10  ;;  %4593 = vst [vmem:[#allocation16_spill] sm:$0xff] %v3058_v9  ;;  %v3063_v10 = vld [vmem:[%s4516_s2 + $0x48] sm:$0xff] }
  0x35   :  { %299 = vmatpush1.msra.mxu0 %v2617_v11  ;;  %382 = vmatpush1.msra.mxu1 %v2617_v11  ;;  %4594 = vst [vmem:[#allocation17_spill] sm:$0xff] %v3063_v10  ;;  %v3070_v11 = vld [vmem:[%s4516_s2 + $0x40] sm:$0xff] }
  0x36   :  { %300 = vmatprep.subr.mxu0 %v2624_v12  ;;  %383 = vmatprep.subr.mxu1 %v2624_v12  ;;  %4595 = vst [vmem:[#allocation18_spill] sm:$0xff] %v3070_v11  ;;  %v3076_v12 = vld [vmem:[%s4516_s2 + $0x38] sm:$0xff] }
  0x37   :  { %301 = vmatpush1.msra.mxu0 %v2631_v13  ;;  %384 = vmatpush1.msra.mxu1 %v2631_v13  ;;  %4596 = vst [vmem:[#allocation19_spill] sm:$0xff] %v3076_v12  ;;  %v3082_v13 = vld [vmem:[%s4516_s2 + $0x30] sm:$0xff] }
  0x38   :  { %302 = vmatprep.subr.mxu0 %v2638_v14  ;;  %385 = vmatprep.subr.mxu1 %v2638_v14  ;;  %4597 = vst [vmem:[#allocation20_spill] sm:$0xff] %v3082_v13  ;;  %v3088_v14 = vld [vmem:[%s4516_s2 + $0x28] sm:$0xff] }
  0x39   :  { %303 = vmatpush1.msra.mxu0 %v2645_v15  ;;  %386 = vmatpush1.msra.mxu1 %v2645_v15  ;;  %4598 = vst [vmem:[#allocation21_spill] sm:$0xff] %v3088_v14  ;;  %v3094_v15 = vld [vmem:[%s4516_s2 + $0x20] sm:$0xff] }
  0x3a   :  { %304 = vmatprep.subr.mxu0 %v2652_v16  ;;  %387 = vmatprep.subr.mxu1 %v2652_v16  ;;  %4599 = vst [vmem:[#allocation22_spill] sm:$0xff] %v3094_v15  ;;  %v3100_v16 = vld [vmem:[%s4516_s2 + $0x18] sm:$0xff] }
  0x3b   :  { %305 = vmatpush1.msra.mxu0 %v2659_v17  ;;  %388 = vmatpush1.msra.mxu1 %v2659_v17  ;;  %4600 = vst [vmem:[#allocation23_spill] sm:$0xff] %v3100_v16  ;;  %v3106_v17 = vld [vmem:[%s4516_s2 + $0x10] sm:$0xff] }
  0x3c   :  { %306 = vmatprep.subr.mxu0 %v2666_v18  ;;  %389 = vmatprep.subr.mxu1 %v2666_v18  ;;  %4601 = vst [vmem:[#allocation24_spill] sm:$0xff] %v3106_v17  ;;  %v3112_v18 = vld [vmem:[%s4516_s2 + $0x8] sm:$0xff] }
  0x3d   :  { %307 = vmatpush1.msra.mxu0 %v2673_v19  ;;  %390 = vmatpush1.msra.mxu1 %v2673_v19  ;;  %4602 = vst [vmem:[#allocation25_spill] sm:$0xff] %v3112_v18  ;;  %v3118_v19 = vld [vmem:[%s4516_s2] sm:$0xff] }
  0x3e   :  { %308 = vmatprep.subr.mxu0 %v2680_v20  ;;  %391 = vmatprep.subr.mxu1 %v2680_v20  ;;  %4603 = vst [vmem:[#allocation26_spill] sm:$0xff] %v3118_v19  ;;  %v4526_v20 = vmov 0.0  }
  0x3f   :  { %309 = vmatpush1.msra.mxu0 %v2687_v21  ;;  %392 = vmatpush1.msra.mxu1 %v2687_v21  ;;  %v3126_v21 = vld [vmem:[%s4516_s2 + $0x1f8] sm:$0xff] }
  0x40   :  { %310 = vmatprep.subr.mxu0 %v2694_v22  ;;  %393 = vmatprep.subr.mxu1 %v2694_v22  ;;  %v3131_v22 = vld [vmem:[%s4516_s2 + $0x1f0] sm:$0xff] }
  0x41   :  { %311 = vmatpush1.msra.mxu0 %v2701_v23  ;;  %394 = vmatpush1.msra.mxu1 %v2701_v23  ;;  %v3136_v23 = vld [vmem:[%s4516_s2 + $0x1e8] sm:$0xff] }
  0x42   :  { %312 = vmatprep.subr.mxu0 %v2708_v24  ;;  %395 = vmatprep.subr.mxu1 %v2708_v24  ;;  %v3142_v24 = vld [vmem:[%s4516_s2 + $0x1e0] sm:$0xff] }
  0x43   :  { %313 = vmatpush1.msra.mxu0 %v2715_v25  ;;  %396 = vmatpush1.msra.mxu1 %v2715_v25  ;;  %v3148_v25 = vld [vmem:[%s4516_s2 + $0x1d8] sm:$0xff] }
  0x44   :  { %314 = vmatprep.subr.mxu0 %v2722_v26  ;;  %397 = vmatprep.subr.mxu1 %v2722_v26  ;;  %v3153_v26 = vld [vmem:[%s4516_s2 + $0x3f8] sm:$0xff] }
  0x45   :  { %315 = vmatpush1.msra.mxu0 %v2729_v27  ;;  %398 = vmatpush1.msra.mxu1 %v2729_v27  ;;  %4604 = vst [vmem:[#allocation27_spill] sm:$0xff] %v3153_v26  ;;  %v3159_v27 = vld [vmem:[%s4516_s2 + $0x1d0] sm:$0xff] }
  0x46   :  { %316 = vmatprep.subr.mxu0 %v2736_v28  ;;  %399 = vmatprep.subr.mxu1 %v2736_v28  ;;  %v3166_v28 = vld [vmem:[%s4516_s2 + $0x1c8] sm:$0xff] }
  0x47   :  { %317 = vmatpush1.msra.mxu0 %v2743_v29  ;;  %400 = vmatpush1.msra.mxu1 %v2743_v29  ;;  %v3172_v29 = vld [vmem:[%s4516_s2 + $0x1c0] sm:$0xff] }
  0x48   :  { %318 = vmatprep.subr.mxu0 %v2750_v30  ;;  %401 = vmatprep.subr.mxu1 %v2750_v30  ;;  %v3178_v30 = vld [vmem:[%s4516_s2 + $0x1b8] sm:$0xff] }
  0x49   :  { %319 = vmatpush1.msra.mxu0 %v2757_v31  ;;  %402 = vmatpush1.msra.mxu1 %v2757_v31  ;;  %v3184_v31 = vld [vmem:[%s4516_s2 + $0x1b0] sm:$0xff] }
  0x4a   :  { %1953 = vmatprep.subr.msk.mxu0 %vm98_vm0, %v2764_v32  ;;  %1957 = vmatprep.subr.msk.mxu1 %vm98_vm0, %v2764_v32  ;;  %v3190_v32 = vld [vmem:[%s4516_s2 + $0x1a8] sm:$0xff] }
  0x4b   :  { %1954 = vmatpush2.msk.msra.mxu0 %vm98_vm0, %v2771_v33  ;;  %1958 = vmatpush2.msk.msra.mxu1 %vm98_vm0, %v2771_v33  ;;  %v3196_v33 = vld [vmem:[%s4516_s2 + $0x1a0] sm:$0xff] }
  0x4c   :  { %350 = vmatprep.subr.mxu0 %v2778_v34  ;;  %433 = vmatprep.subr.mxu1 %v2778_v34  ;;  %v3202_v34 = vld [vmem:[%s4516_s2 + $0x198] sm:$0xff] }
  0x4d   :  { %351 = vmatpush2.msra.mxu0 %v2787_v35  ;;  %1955 = vmatprep.mubr.msk.f32.mxu0 %vm91_vm1, %v48_v44  ;;  %v3264_v44 = vld [vmem:[%s4516_s2 + $0x148] sm:$0xff] }
  0x4e   :  { %434 = vmatpush2.msra.mxu1 %v2787_v35  ;;  %1959 = vmatprep.mubr.msk.f32.mxu1 %vm91_vm1, %v52_v45  ;;  %v3208_v35 = vld [vmem:[%s4516_s2 + $0x190] sm:$0xff]  ;;  %v3270_v45 = vld [vmem:[%s4516_s2 + $0x140] sm:$0xff] }
  0x4f   :  { %353 = vmatmul.mubr.f32.vlgmr.msra.gmra.mxu0 %v47_v46  ;;  %436 = vmatmul.mubr.f32.vlgmr.msra.gmra.mxu1 %v51_v47  ;;  %v3276_v46 = vld [vmem:[%s4516_s2 + $0x138] sm:$0xff]  ;;  %v3282_v47 = vld [vmem:[%s4516_s2 + $0x130] sm:$0xff] }
  0x50   :  { %1956 = vmatprep.mubr.msk.f32.mxu0 %vm91_vm1, %v50_v48  ;;  %1960 = vmatprep.mubr.msk.f32.mxu1 %vm91_vm1, %v54_v49  ;;  %v3288_v48 = vld [vmem:[%s4516_s2 + $0x128] sm:$0xff]  ;;  %v3294_v49 = vld [vmem:[%s4516_s2 + $0x120] sm:$0xff] }
  0x51   :  { %594 = vmatprep.subr.mxu1 %v2924_v50  ;;  %523 = vmatprep.subr.mxu0 %v3126_v21 }
  0x52   :  { %595 = vmatpush1.msra.mxu1 %v2929_v51  ;;  %524 = vmatpush1.msra.mxu0 %v3131_v22 }
  0x53   :  { %359 = vmatmul.mubr.f32.gmra.mxu0 %v49_v52  ;;  %442 = vmatmul.mubr.f32.gmra.mxu1 %v53_v53  ;;  %v3300_v52 = vld [vmem:[%s4516_s2 + $0x118] sm:$0xff]  ;;  %v3306_v53 = vld [vmem:[%s4516_s2 + $0x110] sm:$0xff] }
  0x54   :  { %596 = vmatprep.subr.mxu1 %v2943_v54  ;;  %658 = vmatprep.mubr.f32.mxu1 %v4526_v20 }
  0x55   :  { %597 = vmatpush1.msra.mxu1 %v2949_v55  ;;  %587 = vmatprep.mubr.f32.mxu0 %v4526_v20  ;;  %v3312_v20 = vld [vmem:[%s4516_s2 + $0x108] sm:$0xff] }
  0x56   :  { %598 = vmatprep.subr.mxu1 %v2954_v56  ;;  %525 = vmatprep.subr.mxu0 %v3136_v23 }
  0x57   :  { %599 = vmatpush1.msra.mxu1 %v2960_v57  ;;  %526 = vmatpush1.msra.mxu0 %v3142_v24 }
  0x58   :  { %600 = vmatprep.subr.mxu1 %v2966_v58  ;;  %527 = vmatprep.subr.mxu0 %v3148_v25 }
  0x59   :  { %601 = vmatpush1.msra.mxu1 %v2972_v59  ;;  %528 = vmatpush1.msra.mxu0 %v3159_v27 }
  0x5a   :  { %602 = vmatprep.subr.mxu1 %v2978_v60  ;;  %529 = vmatprep.subr.mxu0 %v3166_v28 }
  0x5b   :  { %603 = vmatpush1.msra.mxu1 %v2984_v61  ;;  %530 = vmatpush1.msra.mxu0 %v3172_v29 }
  0x5c   :  { %604 = vmatprep.subr.mxu1 %v2990_v62  ;;  %531 = vmatprep.subr.mxu0 %v3178_v30 }
  0x5d   :  { %605 = vmatpush1.msra.mxu1 %v2996_v63  ;;  %532 = vmatpush1.msra.mxu0 %v3184_v31 }
  0x5e   :  { %606 = vmatprep.subr.mxu1 %v3002_v0  ;;  %533 = vmatprep.subr.mxu0 %v3190_v32 }
  0x5f   :  { %607 = vmatpush1.msra.mxu1 %v3008_v1  ;;  %534 = vmatpush1.msra.mxu0 %v3196_v33 }
  0x60   :  { %608 = vmatprep.subr.mxu1 %v3014_v2  ;;  %535 = vmatprep.subr.mxu0 %v3202_v34 }
  0x61   :  { %609 = vmatpush1.msra.mxu1 %v3020_v3  ;;  %536 = vmatpush1.msra.mxu0 %v3208_v35 }
  0x62   :  { %610 = vmatprep.subr.mxu1 %v3026_v4  ;;  %537 = vmatprep.subr.mxu0 %v3214_v36 }
  0x63   :  { %611 = vmatpush1.msra.mxu1 %v3032_v5  ;;  %538 = vmatpush1.msra.mxu0 %v3220_v37 }
  0x64   :  { %612 = vmatprep.subr.mxu1 %v3038_v6  ;;  %539 = vmatprep.subr.mxu0 %v3226_v38 }
  0x65   :  { %613 = vmatpush1.msra.mxu1 %v3044_v7  ;;  %540 = vmatpush1.msra.mxu0 %v3232_v39 }
  0x66   :  { %614 = vmatprep.subr.mxu1 %v3050_v8  ;;  %541 = vmatprep.subr.mxu0 %v3238_v40 }
  0x67   :  { %615 = vmatpush1.msra.mxu1 %v3058_v9  ;;  %542 = vmatpush1.msra.mxu0 %v3244_v41 }
  0x68   :  { %616 = vmatprep.subr.mxu1 %v3063_v10  ;;  %543 = vmatprep.subr.mxu0 %v3250_v42 }
  0x69   :  { %617 = vmatpush1.msra.mxu1 %v3070_v11  ;;  %544 = vmatpush1.msra.mxu0 %v3256_v43 }
  0x6a   :  { %618 = vmatprep.subr.mxu1 %v3076_v12  ;;  %545 = vmatprep.subr.mxu0 %v3264_v44  ;;  %v3330_v12 = vld [vmem:[%s4517_s3] ss:$0 sm:$0xff] }
  0x6b   :  { %619 = vmatpush1.msra.mxu1 %v3082_v13  ;;  %546 = vmatpush1.msra.mxu0 %v3270_v45 }
  0x6c   :  { %620 = vmatprep.subr.mxu1 %v3088_v14  ;;  %547 = vmatprep.subr.mxu0 %v3276_v46 }
  0x6d   :  { %621 = vmatpush1.msra.mxu1 %v3094_v15  ;;  %548 = vmatpush1.msra.mxu0 %v3282_v47 }
  0x6e   :  { %622 = vmatprep.subr.mxu1 %v3100_v16  ;;  %549 = vmatprep.subr.mxu0 %v3288_v48 }
  0x6f   :  { %623 = vmatpush1.msra.mxu1 %v3106_v17  ;;  %550 = vmatpush1.msra.mxu0 %v3294_v49 }
  0x70   :  { %624 = vmatprep.subr.mxu1 %v3112_v18  ;;  %551 = vmatprep.subr.mxu0 %v3300_v52 }
  0x71   :  { %625 = vmatpush1.msra.mxu1 %v3118_v19  ;;  %552 = vmatpush1.msra.mxu0 %v3306_v53  ;;  %v3324_v19 = vld [vmem:[%s4516_s2 + $0x2f8] sm:$0xff] }
  0x72   :  { %817 = vmatprep.subr.mxu1 %v3153_v26  ;;  %553 = vmatprep.subr.mxu0 %v3312_v20  ;;  %v3318_v26 = vld [vmem:[%s4516_s2 + $0x100] sm:$0xff] }
  0x73   :  { %554 = vmatpush1.msra.mxu0 %v3318_v26 }
  0x74   :  { %705 = vmatprep.subr.mxu0 %v3324_v19 }
  0xe7   :  { %v171_v18 = vpop.f32.mrf.mxu0  ;;  %v254_v17 = vpop.f32.mrf.mxu1 }
  0xe8   :  { %v265_v16 = vmax.f32 %v171_v18, %v254_v17  ;;  %v3336_v17 = vld [vmem:[%s4516_s2 + $0x3f0] sm:$0xff] }
  0xe9   :  { %v173_v15 = vpop.f32.mrf.mxu0  ;;  %v256_v14 = vpop.f32.mrf.mxu1  ;;  %4605 = vst [vmem:[#allocation28_spill] sm:$0xff] %v3336_v17 }
  0xea   :  { %v266_v13 = vmax.f32 %v173_v15, %v256_v14  ;;  %v3341_v14 = vld [vmem:[%s4516_s2 + $0x3e8] sm:$0xff]  ;;  %v3378_v15 = vld [vmem:[%s4516_s2 + $0x3b8] sm:$0xff] }
  0xeb   :  { %4606 = vst [vmem:[#allocation29_spill] sm:$0xff] %v3341_v14  ;;  %4613 = vst [vmem:[#allocation35_spill] sm:$0xff] %v3378_v15 }
  0xec   :  { %v269_v11 = vmax.f32 %v265_v16, %v266_v13 }
  0xed   :  { %v177_v10 = vpop.f32.mrf.mxu0  ;;  %v260_v9 = vpop.f32.mrf.mxu1 }
  0xee   :  { %v278_v8 = vadd.f32 %v3330_v12, %v269_v11  ;;  %v267_v7 = vmax.f32 %v177_v10, %v260_v9  ;;  %v3346_v9 = vld [vmem:[%s4516_s2 + $0x3e0] sm:$0xff] }
  0xef   :  { %v179_v6 = vpop.f32.mrf.mxu0  ;;  %v262_v5 = vpop.f32.mrf.mxu1  ;;  %4607 = vst [vmem:[#allocation30_spill] sm:$0xff] %v3346_v9  ;;  %v3372_v11 = vld [vmem:[%s4516_s2 + $0x3c0] sm:$0xff] }
  0xf0   :  { %v280_v4 = vmax.f32 %v278_v8, 0.0  ;;  %v268_v3 = vmax.f32 %v179_v6, %v262_v5  ;;  %v3352_v5 = vld [vmem:[%s4516_s2 + $0x3d8] sm:$0xff]  ;;  %v4609_v6 = vmov 0.0   ;;  %4612 = vst [vmem:[#allocation34_spill] sm:$0xff] %v3372_v11 }
  0xf1   :  { %4608 = vst [vmem:[#allocation31_spill] sm:$0xff] %v3352_v5 }
  0xf2   :  { %v270_v13 = vmax.f32 %v267_v7, %v268_v3  ;;  %659 = vmatmul.mubr.f32.vlgmr.msra.gmra.mxu1 %v280_v4  ;;  %v3360_v3 = vld [vmem:[%s4516_s2 + $0x3d0] sm:$0xff]  ;;  %v3366_v7 = vld [vmem:[%s4516_s2 + $0x3c8] sm:$0xff] }
  0xf3   :  { %818 = vmatpush1.msra.mxu1 %v3336_v17  ;;  %881 = vmatprep.mubr.f32.mxu1 %v4609_v6  ;;  %4610 = vst [vmem:[#allocation32_spill] sm:$0xff] %v3360_v3  ;;  %4611 = vst [vmem:[#allocation33_spill] sm:$0xff] %v3366_v7 }
  0xf4   :  { %v279_v8 = vadd.f32 %v3330_v12, %v270_v13  ;;  %819 = vmatprep.subr.mxu1 %v3341_v14  ;;  %v3384_v13 = vld [vmem:[%s4516_s2 + $0x3b0] sm:$0xff] }
  0xf5   :  { %820 = vmatpush1.msra.mxu1 %v3346_v9  ;;  %4614 = vst [vmem:[#allocation36_spill] sm:$0xff] %v3384_v13 }
  0xf6   :  { %v281_v10 = vmax.f32 %v279_v8, 0.0  ;;  %821 = vmatprep.subr.mxu1 %v3352_v5  ;;  %v701_v8 = vrot.slane %v280_v4, 2  ;;  %v923_v5 = vrot.slane %v280_v4, 4  ;;  %v3408_v4 = vld [vmem:[%s4516_s2 + $0x398] sm:$0xff] }
  0xf7   :  { %822 = vmatpush1.msra.mxu1 %v3360_v3  ;;  %v3390_v3 = vld [vmem:[%s4516_s2 + $0x3a8] sm:$0xff]  ;;  %4617 = vst [vmem:[#allocation39_spill] sm:$0xff] %v3408_v4 }
  0xf8   :  { %v702_v16 = vrot.slane %v281_v10, 2  ;;  %v924_v18 = vrot.slane %v281_v10, 4  ;;  %823 = vmatprep.subr.mxu1 %v3366_v7  ;;  %4615 = vst [vmem:[#allocation37_spill] sm:$0xff] %v3390_v3  ;;  %v3396_v10 = vld [vmem:[%s4516_s2 + $0x3a0] sm:$0xff] }
  0xf9   :  { %824 = vmatpush1.msra.mxu1 %v3372_v11  ;;  %4616 = vst [vmem:[#allocation38_spill] sm:$0xff] %v3396_v10 }
  0xfa   :  { %825 = vmatprep.subr.mxu1 %v3378_v15  ;;  %v3399_v7 = vsel %vm700_vm2, %v701_v8, %v702_v16  ;;  %v3402_v9 = vsel %vm98_vm0, %v923_v5, %v924_v18  ;;  %v3414_v15 = vld [vmem:[%s4516_s2 + $0x390] sm:$0xff]  ;;  %v3420_v5 = vld [vmem:[%s4516_s2 + $0x388] sm:$0xff]  ;;  %v3426_v16 = vld [vmem:[%s4516_s2 + $0x380] sm:$0xff] }
  0xfb   :  { %826 = vmatpush1.msra.mxu1 %v3384_v13  ;;  %4618 = vst [vmem:[#allocation40_spill] sm:$0xff] %v3414_v15  ;;  %4619 = vst [vmem:[#allocation41_spill] sm:$0xff] %v3420_v5  ;;  %v3432_v18 = vld [vmem:[%s4516_s2 + $0x378] sm:$0xff]  ;;  %v3438_v8 = vld [vmem:[%s4516_s2 + $0x370] sm:$0xff] }
  0xfc   :  { %827 = vmatprep.subr.mxu1 %v3390_v3  ;;  %4620 = vst [vmem:[#allocation42_spill] sm:$0xff] %v3426_v16  ;;  %4621 = vst [vmem:[#allocation43_spill] sm:$0xff] %v3432_v18 }
  0xfd   :  { %828 = vmatpush1.msra.mxu1 %v3396_v10  ;;  %4622 = vst [vmem:[#allocation44_spill] sm:$0xff] %v3438_v8 }
  0xfe   :  { %829 = vmatprep.subr.mxu1 %v3408_v4  ;;  %v3444_v4 = vld [vmem:[%s4516_s2 + $0x368] sm:$0xff] }
  0xff   :  { %830 = vmatpush1.msra.mxu1 %v3414_v15  ;;  %4623 = vst [vmem:[#allocation45_spill] sm:$0xff] %v3444_v4  ;;  %v3450_v15 = vld [vmem:[%s4516_s2 + $0x360] sm:$0xff] }
 0x100   :  { %831 = vmatprep.subr.mxu1 %v3420_v5  ;;  %4624 = vst [vmem:[#allocation46_spill] sm:$0xff] %v3450_v15  ;;  %v3456_v5 = vld [vmem:[%s4516_s2 + $0x358] sm:$0xff] }
 0x101   :  { %832 = vmatpush1.msra.mxu1 %v3426_v16  ;;  %4625 = vst [vmem:[#allocation47_spill] sm:$0xff] %v3456_v5  ;;  %v3462_v16 = vld [vmem:[%s4516_s2 + $0x350] sm:$0xff] }
 0x102   :  { %833 = vmatprep.subr.mxu1 %v3432_v18  ;;  %4626 = vst [vmem:[#allocation48_spill] sm:$0xff] %v3462_v16  ;;  %v3468_v18 = vld [vmem:[%s4516_s2 + $0x348] sm:$0xff] }
 0x103   :  { %834 = vmatpush1.msra.mxu1 %v3438_v8  ;;  %4627 = vst [vmem:[#allocation49_spill] sm:$0xff] %v3468_v18  ;;  %v3474_v8 = vld [vmem:[%s4516_s2 + $0x340] sm:$0xff] }
 0x104   :  { %835 = vmatprep.subr.mxu1 %v3444_v4  ;;  %4628 = vst [vmem:[#allocation50_spill] sm:$0xff] %v3474_v8  ;;  %v3480_v4 = vld [vmem:[%s4516_s2 + $0x338] sm:$0xff] }
 0x105   :  { %836 = vmatpush1.msra.mxu1 %v3450_v15  ;;  %4629 = vst [vmem:[#allocation51_spill] sm:$0xff] %v3480_v4  ;;  %v3486_v15 = vld [vmem:[%s4516_s2 + $0x330] sm:$0xff] }
 0x106   :  { %837 = vmatprep.subr.mxu1 %v3456_v5  ;;  %4630 = vst [vmem:[#allocation52_spill] sm:$0xff] %v3486_v15  ;;  %v3492_v5 = vld [vmem:[%s4516_s2 + $0x328] sm:$0xff] }
 0x107   :  { %838 = vmatpush1.msra.mxu1 %v3462_v16  ;;  %4631 = vst [vmem:[#allocation53_spill] sm:$0xff] %v3492_v5  ;;  %v3498_v16 = vld [vmem:[%s4516_s2 + $0x320] sm:$0xff] }
 0x108   :  { %839 = vmatprep.subr.mxu1 %v3468_v18  ;;  %4632 = vst [vmem:[#allocation54_spill] sm:$0xff] %v3498_v16  ;;  %v3504_v18 = vld [vmem:[%s4516_s2 + $0x318] sm:$0xff] }
 0x109   :  { %840 = vmatpush1.msra.mxu1 %v3474_v8  ;;  %4633 = vst [vmem:[#allocation55_spill] sm:$0xff] %v3504_v18  ;;  %v3510_v8 = vld [vmem:[%s4516_s2 + $0x310] sm:$0xff] }
 0x10a   :  { %841 = vmatprep.subr.mxu1 %v3480_v4  ;;  %4634 = vst [vmem:[#allocation56_spill] sm:$0xff] %v3510_v8  ;;  %v3516_v4 = vld [vmem:[%s4516_s2 + $0x308] sm:$0xff] }
 0x10b   :  { %842 = vmatpush1.msra.mxu1 %v3486_v15  ;;  %4635 = vst [vmem:[#allocation57_spill] sm:$0xff] %v3516_v4  ;;  %v3522_v15 = vld [vmem:[%s4516_s2 + $0x300] sm:$0xff] }
 0x10c   :  { %843 = vmatprep.subr.mxu1 %v3492_v5  ;;  %4636 = vst [vmem:[#allocation58_spill] sm:$0xff] %v3522_v15 }
 0x10d   :  { %844 = vmatpush1.msra.mxu1 %v3498_v16 }
 0x10e   :  { %845 = vmatprep.subr.mxu1 %v3504_v18 }
 0x10f   :  { %v354_v5 = vpop.f32.mrf.mxu0  ;;  %v437_v10 = vpop.f32.mrf.mxu1  ;;  %846 = vmatpush1.msra.mxu1 %v3510_v8 }
 0x110   :  { %847 = vmatprep.subr.mxu1 %v3516_v4  ;;  %v448_v13 = vmax.f32 %v354_v5, %v437_v10  ;;  %v3592_v10 = vld [vmem:[%s4516_s2 + $0x2b0] sm:$0xff]  ;;  %v3606_v5 = vld [vmem:[%s4516_s2 + $0x2a0] sm:$0xff] }
 0x111   :  { %v356_v3 = vpop.f32.mrf.mxu0  ;;  %v439_v16 = vpop.f32.mrf.mxu1  ;;  %848 = vmatpush1.msra.mxu1 %v3522_v15  ;;  %v3534_v15 = vld [vmem:[%s4516_s2 + $0x2f0] sm:$0xff] }
 0x112   :  { %v449_v11 = vmax.f32 %v356_v3, %v439_v16  ;;  %1000 = vmatprep.subr.mxu1 %v3126_v21  ;;  %v3539_v21 = vld [vmem:[%s4516_s2 + $0x2e8] sm:$0xff]  ;;  %v3613_v16 = vld [vmem:[%s4516_s2 + $0x298] sm:$0xff] }
 0x113   :  { %v360_v18 = vpop.f32.mrf.mxu0  ;;  %v443_v14 = vpop.f32.mrf.mxu1 }
 0x114   :  { %v452_v17 = vmax.f32 %v448_v13, %v449_v11  ;;  %v450_v2 = vmax.f32 %v360_v18, %v443_v14  ;;  %v3583_v11 = vld [vmem:[%s4516_s2 + $0x2b8] sm:$0xff]  ;;  %v3788_v18 = vld [vmem:[%s4516_s2 + $0x4d0] sm:$0xff] }
 0x115   :  { %v362_v1 = vpop.f32.mrf.mxu0  ;;  %v445_v0 = vpop.f32.mrf.mxu1 }
 0x116   :  { %v454_v63 = vadd.f32 %v3330_v12, %v452_v17  ;;  %v451_v62 = vmax.f32 %v362_v1, %v445_v0  ;;  %v3562_v1 = vld [vmem:[%s4516_s2 + $0x2d0] sm:$0xff]  ;;  %v3576_v17 = vld [vmem:[%s4516_s2 + $0x2c0] sm:$0xff] }
 0x118   :  { %v3529_v8 = vmax.f32 %v454_v63, 0.0  ;;  %v453_v4 = vmax.f32 %v450_v2, %v451_v62  ;;  %v3548_v63 = vld [vmem:[%s4516_s2 + $0x2e0] sm:$0xff]  ;;  %v3554_v62 = vld [vmem:[%s4516_s2 + $0x2d8] sm:$0xff]  ;;  %v3568_v2 = vld [vmem:[%s4516_s2 + $0x2c8] sm:$0xff] }
 0x11a   :  { %v3542_v14 = vadd.f32 %v3330_v12, %v453_v4  ;;  %588 = vmatmul.mubr.f32.vlgmr.msra.gmra.mxu0 %v3529_v8  ;;  %v813_v3 = vrot.slane %v3529_v8, 2  ;;  %v3599_v4 = vld [vmem:[%s4516_s2 + $0x2a8] sm:$0xff] }
 0x11b   :  { %706 = vmatpush1.msra.mxu0 %v3534_v15  ;;  %769 = vmatprep.mubr.f32.mxu0 %v4609_v6 }
 0x11c   :  { %v457_v0 = vmax.f32 %v3542_v14, 0.0  ;;  %707 = vmatprep.subr.mxu0 %v3539_v21 }
 0x11d   :  { %708 = vmatpush1.msra.mxu0 %v3548_v63 }
 0x11e   :  { %v814_v12 = vrot.slane %v457_v0, 2  ;;  %709 = vmatprep.subr.mxu0 %v3554_v62 }
 0x11f   :  { %710 = vmatpush1.msra.mxu0 %v3562_v1 }
 0x120   :  { %711 = vmatprep.subr.mxu0 %v3568_v2  ;;  %v3587_v13 = vsel %vm700_vm2, %v813_v3, %v814_v12  ;;  %v3902_v12 = vld [vmem:[%s4516_s2 + $0x450] sm:$0xff]  ;;  %v3916_v3 = vld [vmem:[%s4516_s2 + $0x440] sm:$0xff] }
 0x121   :  { %712 = vmatpush1.msra.mxu0 %v3576_v17  ;;  %882 = vmatmul.mubr.f32.vlgmr.msra.gmra.mxu1 %v3587_v13 }
 0x122   :  { %713 = vmatprep.subr.mxu0 %v3583_v11  ;;  %1001 = vmatpush1.msra.mxu1 %v3131_v22  ;;  %v3620_v22 = vld [vmem:[%s4516_s2 + $0x290] sm:$0xff] }
 0x123   :  { %714 = vmatpush1.msra.mxu0 %v3592_v10  ;;  %1002 = vmatprep.subr.mxu1 %v3136_v23  ;;  %v3627_v23 = vld [vmem:[%s4516_s2 + $0x288] sm:$0xff] }
 0x124   :  { %715 = vmatprep.subr.mxu0 %v3599_v4  ;;  %1003 = vmatpush1.msra.mxu1 %v3142_v24  ;;  %v3634_v24 = vld [vmem:[%s4516_s2 + $0x280] sm:$0xff] }
 0x125   :  { %716 = vmatpush1.msra.mxu0 %v3606_v5  ;;  %1004 = vmatprep.subr.mxu1 %v3148_v25  ;;  %v3641_v25 = vld [vmem:[%s4516_s2 + $0x278] sm:$0xff] }
 0x126   :  { %717 = vmatprep.subr.mxu0 %v3613_v16  ;;  %1005 = vmatpush1.msra.mxu1 %v3159_v27  ;;  %v3648_v27 = vld [vmem:[%s4516_s2 + $0x270] sm:$0xff] }
 0x127   :  { %718 = vmatpush1.msra.mxu0 %v3620_v22  ;;  %1006 = vmatprep.subr.mxu1 %v3166_v28  ;;  %v3655_v28 = vld [vmem:[%s4516_s2 + $0x268] sm:$0xff] }
 0x128   :  { %719 = vmatprep.subr.mxu0 %v3627_v23  ;;  %1007 = vmatpush1.msra.mxu1 %v3172_v29  ;;  %v3662_v29 = vld [vmem:[%s4516_s2 + $0x260] sm:$0xff] }
 0x129   :  { %720 = vmatpush1.msra.mxu0 %v3634_v24  ;;  %1008 = vmatprep.subr.mxu1 %v3178_v30  ;;  %v3669_v30 = vld [vmem:[%s4516_s2 + $0x258] sm:$0xff] }
 0x12a   :  { %721 = vmatprep.subr.mxu0 %v3641_v25  ;;  %1009 = vmatpush1.msra.mxu1 %v3184_v31  ;;  %v3676_v31 = vld [vmem:[%s4516_s2 + $0x250] sm:$0xff] }
 0x12b   :  { %722 = vmatpush1.msra.mxu0 %v3648_v27  ;;  %1010 = vmatprep.subr.mxu1 %v3190_v32  ;;  %v3683_v32 = vld [vmem:[%s4516_s2 + $0x248] sm:$0xff] }
 0x12c   :  { %723 = vmatprep.subr.mxu0 %v3655_v28  ;;  %1011 = vmatpush1.msra.mxu1 %v3196_v33  ;;  %v3690_v33 = vld [vmem:[%s4516_s2 + $0x240] sm:$0xff] }
 0x12d   :  { %724 = vmatpush1.msra.mxu0 %v3662_v29  ;;  %1012 = vmatprep.subr.mxu1 %v3202_v34  ;;  %v3697_v34 = vld [vmem:[%s4516_s2 + $0x238] sm:$0xff] }
 0x12e   :  { %725 = vmatprep.subr.mxu0 %v3669_v30  ;;  %1013 = vmatpush1.msra.mxu1 %v3208_v35  ;;  %v3704_v35 = vld [vmem:[%s4516_s2 + $0x230] sm:$0xff] }
 0x12f   :  { %726 = vmatpush1.msra.mxu0 %v3676_v31  ;;  %1014 = vmatprep.subr.mxu1 %v3214_v36  ;;  %v3711_v36 = vld [vmem:[%s4516_s2 + $0x228] sm:$0xff] }
 0x130   :  { %727 = vmatprep.subr.mxu0 %v3683_v32  ;;  %1015 = vmatpush1.msra.mxu1 %v3220_v37  ;;  %v3718_v37 = vld [vmem:[%s4516_s2 + $0x220] sm:$0xff] }
 0x131   :  { %728 = vmatpush1.msra.mxu0 %v3690_v33  ;;  %1016 = vmatprep.subr.mxu1 %v3226_v38  ;;  %v3725_v38 = vld [vmem:[%s4516_s2 + $0x218] sm:$0xff] }
 0x132   :  { %729 = vmatprep.subr.mxu0 %v3697_v34  ;;  %1017 = vmatpush1.msra.mxu1 %v3232_v39  ;;  %v3732_v39 = vld [vmem:[%s4516_s2 + $0x210] sm:$0xff] }
 0x133   :  { %730 = vmatpush1.msra.mxu0 %v3704_v35  ;;  %1018 = vmatprep.subr.mxu1 %v3238_v40  ;;  %v3739_v40 = vld [vmem:[%s4516_s2 + $0x208] sm:$0xff] }
 0x134   :  { %731 = vmatprep.subr.mxu0 %v3711_v36  ;;  %1019 = vmatpush1.msra.mxu1 %v3244_v41  ;;  %v3746_v41 = vld [vmem:[%s4516_s2 + $0x200] sm:$0xff] }
 0x135   :  { %732 = vmatpush1.msra.mxu0 %v3718_v37  ;;  %1020 = vmatprep.subr.mxu1 %v3250_v42  ;;  %v3753_v42 = vld [vmem:[%s4516_s2 + $0x4f8] sm:$0xff] }
 0x136   :  { %733 = vmatprep.subr.mxu0 %v3725_v38  ;;  %1021 = vmatpush1.msra.mxu1 %v3256_v43  ;;  %v3760_v43 = vld [vmem:[%s4516_s2 + $0x4f0] sm:$0xff] }
 0x137   :  { %734 = vmatpush1.msra.mxu0 %v3732_v39  ;;  %1022 = vmatprep.subr.mxu1 %v3264_v44  ;;  %v3767_v44 = vld [vmem:[%s4516_s2 + $0x4e8] sm:$0xff] }
 0x138   :  { %735 = vmatprep.subr.mxu0 %v3739_v40  ;;  %1023 = vmatpush1.msra.mxu1 %v3270_v45  ;;  %v3774_v45 = vld [vmem:[%s4516_s2 + $0x4e0] sm:$0xff] }
 0x139   :  { %736 = vmatpush1.msra.mxu0 %v3746_v41  ;;  %1024 = vmatprep.subr.mxu1 %v3276_v46  ;;  %v3781_v46 = vld [vmem:[%s4516_s2 + $0x4d8] sm:$0xff] }
 0x13a   :  { %770 = vmatmul.mubr.f32.vlgmr.msra.gmra.mxu0 %v3399_v7  ;;  %927 = vmatprep.subr.mxu0 %v3753_v42 }
 0x13b   :  { %1025 = vmatpush1.msra.mxu1 %v3282_v47  ;;  %928 = vmatpush1.msra.mxu0 %v3760_v43  ;;  %v3795_v47 = vld [vmem:[%s4516_s2 + $0x4c8] sm:$0xff] }
 0x13c   :  { %1026 = vmatprep.subr.mxu1 %v3288_v48  ;;  %929 = vmatprep.subr.mxu0 %v3767_v44  ;;  %v3804_v48 = vld [vmem:[%s4516_s2 + $0x4c0] sm:$0xff] }
 0x13d   :  { %1027 = vmatpush1.msra.mxu1 %v3294_v49  ;;  %930 = vmatpush1.msra.mxu0 %v3774_v45  ;;  %v3811_v49 = vld [vmem:[%s4516_s2 + $0x4b8] sm:$0xff] }
 0x13e   :  { %1028 = vmatprep.subr.mxu1 %v3300_v52  ;;  %931 = vmatprep.subr.mxu0 %v3781_v46  ;;  %v3818_v52 = vld [vmem:[%s4516_s2 + $0x4b0] sm:$0xff] }
 0x13f   :  { %1029 = vmatpush1.msra.mxu1 %v3306_v53  ;;  %932 = vmatpush1.msra.mxu0 %v3788_v18  ;;  %v3839_v53 = vld [vmem:[%s4516_s2 + $0x498] sm:$0xff] }
 0x140   :  { %1030 = vmatprep.subr.mxu1 %v3312_v20  ;;  %933 = vmatprep.subr.mxu0 %v3795_v47  ;;  %v3825_v20 = vld [vmem:[%s4516_s2 + $0x4a8] sm:$0xff] }
 0x141   :  { %1031 = vmatpush1.msra.mxu1 %v3318_v26  ;;  %1064 = vmatprep.mubr.f32.mxu1 %v4609_v6  ;;  %v3832_v26 = vld [vmem:[%s4516_s2 + $0x4a0] sm:$0xff] }
 0x142   :  { %934 = vmatpush1.msra.mxu0 %v3804_v48  ;;  %1065 = vmatmul.mubr.f32.vlgmr.msra.gmra.mxu1 %v3399_v7  ;;  %v3853_v7 = vld [vmem:[%s4516_s2 + $0x488] sm:$0xff] }
 0x143   :  { %1142 = vmatprep.subr.mxu1 %v3324_v19  ;;  %935 = vmatprep.subr.mxu0 %v3811_v49  ;;  %v3846_v19 = vld [vmem:[%s4516_s2 + $0x490] sm:$0xff] }
 0x144   :  { %1143 = vmatpush1.msra.mxu1 %v3534_v15  ;;  %936 = vmatpush1.msra.mxu0 %v3818_v52  ;;  %v3860_v15 = vld [vmem:[%s4516_s2 + $0x480] sm:$0xff] }
 0x145   :  { %1144 = vmatprep.subr.mxu1 %v3539_v21  ;;  %937 = vmatprep.subr.mxu0 %v3825_v20  ;;  %v3867_v21 = vld [vmem:[%s4516_s2 + $0x478] sm:$0xff] }
 0x146   :  { %1145 = vmatpush1.msra.mxu1 %v3548_v63  ;;  %938 = vmatpush1.msra.mxu0 %v3832_v26  ;;  %v3874_v63 = vld [vmem:[%s4516_s2 + $0x470] sm:$0xff] }
 0x147   :  { %1146 = vmatprep.subr.mxu1 %v3554_v62  ;;  %939 = vmatprep.subr.mxu0 %v3839_v53  ;;  %v3881_v62 = vld [vmem:[%s4516_s2 + $0x468] sm:$0xff] }
 0x148   :  { %1147 = vmatpush1.msra.mxu1 %v3562_v1  ;;  %940 = vmatpush1.msra.mxu0 %v3846_v19  ;;  %v3888_v1 = vld [vmem:[%s4516_s2 + $0x460] sm:$0xff] }
 0x149   :  { %1148 = vmatprep.subr.mxu1 %v3568_v2  ;;  %941 = vmatprep.subr.mxu0 %v3853_v7  ;;  %v3895_v2 = vld [vmem:[%s4516_s2 + $0x458] sm:$0xff] }
 0x14a   :  { %1149 = vmatpush1.msra.mxu1 %v3576_v17  ;;  %942 = vmatpush1.msra.mxu0 %v3860_v15  ;;  %v3909_v17 = vld [vmem:[%s4516_s2 + $0x448] sm:$0xff] }
 0x14b   :  { %1150 = vmatprep.subr.mxu1 %v3583_v11  ;;  %943 = vmatprep.subr.mxu0 %v3867_v21  ;;  %v3923_v11 = vld [vmem:[%s4516_s2 + $0x438] sm:$0xff] }
 0x14c   :  { %1151 = vmatpush1.msra.mxu1 %v3592_v10  ;;  %944 = vmatpush1.msra.mxu0 %v3874_v63  ;;  %v3930_v10 = vld [vmem:[%s4516_s2 + $0x430] sm:$0xff] }
 0x14d   :  { %1152 = vmatprep.subr.mxu1 %v3599_v4  ;;  %945 = vmatprep.subr.mxu0 %v3881_v62  ;;  %v3937_v4 = vld [vmem:[%s4516_s2 + $0x428] sm:$0xff] }
 0x14e   :  { %1153 = vmatpush1.msra.mxu1 %v3606_v5  ;;  %946 = vmatpush1.msra.mxu0 %v3888_v1  ;;  %v3944_v5 = vld [vmem:[%s4516_s2 + $0x420] sm:$0xff] }
 0x14f   :  { %1154 = vmatprep.subr.mxu1 %v3613_v16  ;;  %947 = vmatprep.subr.mxu0 %v3895_v2  ;;  %v3951_v16 = vld [vmem:[%s4516_s2 + $0x418] sm:$0xff] }
 0x150   :  { %1155 = vmatpush1.msra.mxu1 %v3620_v22  ;;  %948 = vmatpush1.msra.mxu0 %v3902_v12  ;;  %v3958_v22 = vld [vmem:[%s4516_s2 + $0x410] sm:$0xff] }
 0x151   :  { %1156 = vmatprep.subr.mxu1 %v3627_v23  ;;  %949 = vmatprep.subr.mxu0 %v3909_v17  ;;  %v3965_v23 = vld [vmem:[%s4516_s2 + $0x408] sm:$0xff] }
 0x152   :  { %1157 = vmatpush1.msra.mxu1 %v3634_v24  ;;  %950 = vmatpush1.msra.mxu0 %v3916_v3  ;;  %v3972_v24 = vld [vmem:[%s4516_s2 + $0x400] sm:$0xff] }
 0x153   :  { %1158 = vmatprep.subr.mxu1 %v3641_v25  ;;  %951 = vmatprep.subr.mxu0 %v3923_v11  ;;  %v4648_v25 = vld [vmem:[#allocation16_spill] sm:$0xff] }
 0x154   :  { %1159 = vmatpush1.msra.mxu1 %v3648_v27  ;;  %952 = vmatpush1.msra.mxu0 %v3930_v10  ;;  %v4649_v27 = vld [vmem:[#allocation17_spill] sm:$0xff] }
 0x155   :  { %1160 = vmatprep.subr.mxu1 %v3655_v28  ;;  %953 = vmatprep.subr.mxu0 %v3937_v4  ;;  %v4650_v28 = vld [vmem:[#allocation18_spill] sm:$0xff] }
 0x156   :  { %1161 = vmatpush1.msra.mxu1 %v3662_v29  ;;  %954 = vmatpush1.msra.mxu0 %v3944_v5  ;;  %v4651_v29 = vld [vmem:[#allocation19_spill] sm:$0xff] }
 0x157   :  { %1162 = vmatprep.subr.mxu1 %v3669_v30  ;;  %955 = vmatprep.subr.mxu0 %v3951_v16  ;;  %v4652_v30 = vld [vmem:[#allocation20_spill] sm:$0xff] }
 0x158   :  { %1163 = vmatpush1.msra.mxu1 %v3676_v31  ;;  %956 = vmatpush1.msra.mxu0 %v3958_v22  ;;  %v4653_v31 = vld [vmem:[#allocation21_spill] sm:$0xff] }
 0x159   :  { %1164 = vmatprep.subr.mxu1 %v3683_v32  ;;  %957 = vmatprep.subr.mxu0 %v3965_v23  ;;  %v4654_v32 = vld [vmem:[#allocation22_spill] sm:$0xff] }
 0x15a   :  { %1165 = vmatpush1.msra.mxu1 %v3690_v33  ;;  %958 = vmatpush1.msra.mxu0 %v3972_v24  ;;  %v4655_v33 = vld [vmem:[#allocation23_spill] sm:$0xff] }
 0x15b   :  { %991 = vmatprep.mubr.f32.mxu0 %v4609_v6  ;;  %1166 = vmatprep.subr.mxu1 %v3697_v34  ;;  %v4656_v34 = vld [vmem:[#allocation24_spill] sm:$0xff] }
 0x15c   :  { %992 = vmatmul.mubr.f32.vlgmr.msra.gmra.mxu0 %v3402_v9  ;;  %1071 = vmatprep.subr.mxu0 %v2924_v50  ;;  %v4637_v50 = vld [vmem:[#allocation5_spill] sm:$0xff] }
 0x15d   :  { %1167 = vmatpush1.msra.mxu1 %v3704_v35  ;;  %1072 = vmatpush1.msra.mxu0 %v2929_v51  ;;  %v4638_v51 = vld [vmem:[#allocation6_spill] sm:$0xff]  ;;  %v4657_v35 = vld [vmem:[#allocation25_spill] sm:$0xff] }
 0x15e   :  { %1168 = vmatprep.subr.mxu1 %v3711_v36  ;;  %1073 = vmatprep.subr.mxu0 %v2943_v54  ;;  %v4639_v54 = vld [vmem:[#allocation7_spill] sm:$0xff]  ;;  %v4658_v36 = vld [vmem:[#allocation26_spill] sm:$0xff] }
 0x15f   :  { %1169 = vmatpush1.msra.mxu1 %v3718_v37  ;;  %1074 = vmatpush1.msra.mxu0 %v2949_v55  ;;  %v4640_v55 = vld [vmem:[#allocation8_spill] sm:$0xff]  ;;  %v4659_v37 = vld [vmem:[#allocation27_spill] sm:$0xff] }
 0x160   :  { %1170 = vmatprep.subr.mxu1 %v3725_v38  ;;  %1075 = vmatprep.subr.mxu0 %v2954_v56  ;;  %v4641_v56 = vld [vmem:[#allocation9_spill] sm:$0xff]  ;;  %v4660_v38 = vld [vmem:[#allocation28_spill] sm:$0xff] }
 0x161   :  { %1171 = vmatpush1.msra.mxu1 %v3732_v39  ;;  %1076 = vmatpush1.msra.mxu0 %v2960_v57  ;;  %v4642_v57 = vld [vmem:[#allocation10_spill] sm:$0xff]  ;;  %v4661_v39 = vld [vmem:[#allocation29_spill] sm:$0xff] }
 0x162   :  { %1172 = vmatprep.subr.mxu1 %v3739_v40  ;;  %1077 = vmatprep.subr.mxu0 %v2966_v58  ;;  %v4643_v58 = vld [vmem:[#allocation11_spill] sm:$0xff]  ;;  %v1289_v40 = vrot.slane %v457_v0, 4  ;;  %v4666_v0 = vld [vmem:[#allocation34_spill] sm:$0xff] }
 0x163   :  { %1173 = vmatpush1.msra.mxu1 %v3746_v41  ;;  %1206 = vmatprep.mubr.f32.mxu1 %v4609_v6  ;;  %v4662_v41 = vld [vmem:[#allocation30_spill] sm:$0xff] }
 0x164   :  { %1078 = vmatpush1.msra.mxu0 %v2972_v59  ;;  %1207 = vmatmul.mubr.f32.vlgmr.msra.gmra.mxu1 %v3587_v13  ;;  %v4644_v59 = vld [vmem:[#allocation12_spill] sm:$0xff]  ;;  %v4647_v13 = vld [vmem:[#allocation15_spill] sm:$0xff] }
 0x165   :  { %1292 = vmatprep.subr.mxu1 %v3753_v42  ;;  %1079 = vmatprep.subr.mxu0 %v2978_v60  ;;  %v4645_v60 = vld [vmem:[#allocation13_spill] sm:$0xff]  ;;  %v4663_v42 = vld [vmem:[#allocation31_spill] sm:$0xff] }
 0x166   :  { %1293 = vmatpush1.msra.mxu1 %v3760_v43  ;;  %1080 = vmatpush1.msra.mxu0 %v2984_v61  ;;  %v4646_v61 = vld [vmem:[#allocation14_spill] sm:$0xff]  ;;  %v4664_v43 = vld [vmem:[#allocation32_spill] sm:$0xff] }
 0x167   :  { %1294 = vmatprep.subr.mxu1 %v3767_v44  ;;  %1081 = vmatprep.subr.mxu0 %v4637_v50  ;;  %v1288_v44 = vrot.slane %v3529_v8, 4  ;;  %v1389_v50 = vld [vmem:[%s4519_s5 + $0x60] sm:$0xff] }
 0x168   :  { %1295 = vmatpush1.msra.mxu1 %v3774_v45  ;;  %1082 = vmatpush1.msra.mxu0 %v4638_v51  ;;  %v4665_v45 = vld [vmem:[#allocation33_spill] sm:$0xff] }
 0x169   :  { %1296 = vmatprep.subr.mxu1 %v3781_v46  ;;  %1083 = vmatprep.subr.mxu0 %v4639_v54  ;;  %v1290_v14 = vsel %vm98_vm0, %v1288_v44, %v1289_v40  ;;  %v4667_v46 = vld [vmem:[#allocation35_spill] sm:$0xff]  ;;  %v2102_v51 = vld [vmem:[%s4519_s5 + $0xe0] sm:$0xff] }
 0x16a   :  { %1297 = vmatpush1.msra.mxu1 %v3788_v18  ;;  %1084 = vmatpush1.msra.mxu0 %v4640_v55  ;;  %v4668_v18 = vld [vmem:[#allocation36_spill] sm:$0xff] }
 0x16b   :  { %1298 = vmatprep.subr.mxu1 %v3795_v47  ;;  %1085 = vmatprep.subr.mxu0 %v4641_v56  ;;  %v4670_v47 = vld [vmem:[#allocation38_spill] sm:$0xff]  ;;  %v1388_v54 = vld [vmem:[%s4519_s5 + $0x58] sm:$0xff]  ;;  %v2090_v40 = vld [vmem:[%s4519_s5 + $0x80] sm:$0xff] }
 0x16c   :  { %1299 = vmatpush1.msra.mxu1 %v3804_v48  ;;  %1086 = vmatpush1.msra.mxu0 %v4642_v57  ;;  %v4671_v48 = vld [vmem:[#allocation39_spill] sm:$0xff] }
 0x16d   :  { %1300 = vmatprep.subr.mxu1 %v3811_v49  ;;  %1087 = vmatprep.subr.mxu0 %v4643_v58  ;;  %v4672_v49 = vld [vmem:[#allocation40_spill] sm:$0xff]  ;;  %v1387_v56 = vld [vmem:[%s4519_s5 + $0x50] sm:$0xff]  ;;  %v1386_v58 = vld [vmem:[%s4519_s5 + $0x48] sm:$0xff] }
 0x16e   :  { %1301 = vmatpush1.msra.mxu1 %v3818_v52  ;;  %1088 = vmatpush1.msra.mxu0 %v4644_v59  ;;  %v4673_v52 = vld [vmem:[#allocation41_spill] sm:$0xff]  ;;  %v2101_v55 = vld [vmem:[%s4519_s5 + $0xd8] sm:$0xff]  ;;  %v2100_v57 = vld [vmem:[%s4519_s5 + $0xd0] sm:$0xff] }
 0x16f   :  { %1302 = vmatprep.subr.mxu1 %v3825_v20  ;;  %1089 = vmatprep.subr.mxu0 %v4645_v60  ;;  %v4674_v20 = vld [vmem:[#allocation42_spill] sm:$0xff]  ;;  %v1385_v60 = vld [vmem:[%s4519_s5 + $0x40] sm:$0xff] }
 0x170   :  { %1303 = vmatpush1.msra.mxu1 %v3832_v26  ;;  %1090 = vmatpush1.msra.mxu0 %v4646_v61  ;;  %v4675_v26 = vld [vmem:[#allocation43_spill] sm:$0xff]  ;;  %v2099_v59 = vld [vmem:[%s4519_s5 + $0xc8] sm:$0xff]  ;;  %v2098_v61 = vld [vmem:[%s4519_s5 + $0xc0] sm:$0xff] }
 0x171   :  { %1304 = vmatprep.subr.mxu1 %v3839_v53  ;;  %1091 = vmatprep.subr.mxu0 %v4647_v13  ;;  %v4676_v53 = vld [vmem:[#allocation44_spill] sm:$0xff] }
 0x172   :  { %1305 = vmatpush1.msra.mxu1 %v3846_v19  ;;  %1092 = vmatpush1.msra.mxu0 %v4648_v25  ;;  %v4677_v19 = vld [vmem:[#allocation45_spill] sm:$0xff]  ;;  %v1384_v13 = vld [vmem:[%s4519_s5 + $0x38] sm:$0xff] }
 0x173   :  { %1306 = vmatprep.subr.mxu1 %v3853_v7  ;;  %1093 = vmatprep.subr.mxu0 %v4649_v27  ;;  %v4678_v7 = vld [vmem:[#allocation46_spill] sm:$0xff]  ;;  %v2097_v25 = vld [vmem:[%s4519_s5 + $0xb8] sm:$0xff] }
 0x174   :  { %1307 = vmatpush1.msra.mxu1 %v3860_v15  ;;  %1094 = vmatpush1.msra.mxu0 %v4650_v28  ;;  %v4679_v15 = vld [vmem:[#allocation47_spill] sm:$0xff] }
 0x175   :  { %1308 = vmatprep.subr.mxu1 %v3867_v21  ;;  %1095 = vmatprep.subr.mxu0 %v4651_v29  ;;  %v4680_v21 = vld [vmem:[#allocation48_spill] sm:$0xff]  ;;  %v1383_v27 = vld [vmem:[%s4519_s5 + $0x30] sm:$0xff]  ;;  %v1382_v29 = vld [vmem:[%s4519_s5 + $0x28] sm:$0xff] }
 0x176   :  { %1309 = vmatpush1.msra.mxu1 %v3874_v63  ;;  %1096 = vmatpush1.msra.mxu0 %v4652_v30  ;;  %v4681_v63 = vld [vmem:[#allocation49_spill] sm:$0xff]  ;;  %v2096_v28 = vld [vmem:[%s4519_s5 + $0xb0] sm:$0xff] }
 0x177   :  { %1310 = vmatprep.subr.mxu1 %v3881_v62  ;;  %1097 = vmatprep.subr.mxu0 %v4653_v31  ;;  %v4682_v62 = vld [vmem:[#allocation50_spill] sm:$0xff]  ;;  %v1381_v31 = vld [vmem:[%s4519_s5 + $0x20] sm:$0xff] }
 0x178   :  { %1311 = vmatpush1.msra.mxu1 %v3888_v1  ;;  %1098 = vmatpush1.msra.mxu0 %v4654_v32  ;;  %v4683_v1 = vld [vmem:[#allocation51_spill] sm:$0xff]  ;;  %v2095_v30 = vld [vmem:[%s4519_s5 + $0xa8] sm:$0xff]  ;;  %v2094_v32 = vld [vmem:[%s4519_s5 + $0xa0] sm:$0xff] }
 0x179   :  { %1312 = vmatprep.subr.mxu1 %v3895_v2  ;;  %1099 = vmatprep.subr.mxu0 %v4655_v33  ;;  %v4684_v2 = vld [vmem:[#allocation52_spill] sm:$0xff] }
 0x17a   :  { %1313 = vmatpush1.msra.mxu1 %v3902_v12  ;;  %1100 = vmatpush1.msra.mxu0 %v4656_v34  ;;  %v4685_v12 = vld [vmem:[#allocation53_spill] sm:$0xff]  ;;  %v1380_v33 = vld [vmem:[%s4519_s5 + $0x18] sm:$0xff] }
 0x17b   :  { %1314 = vmatprep.subr.mxu1 %v3909_v17  ;;  %1101 = vmatprep.subr.mxu0 %v4657_v35  ;;  %v4686_v17 = vld [vmem:[#allocation54_spill] sm:$0xff]  ;;  %v2093_v34 = vld [vmem:[%s4519_s5 + $0x98] sm:$0xff] }
 0x17c   :  { %1315 = vmatpush1.msra.mxu1 %v3916_v3  ;;  %1102 = vmatpush1.msra.mxu0 %v4658_v36  ;;  %v4687_v3 = vld [vmem:[#allocation55_spill] sm:$0xff] }
 0x17d   :  { %1135 = vmatprep.mubr.f32.mxu0 %v4609_v6  ;;  %1316 = vmatprep.subr.mxu1 %v3923_v11  ;;  %v4688_v11 = vld [vmem:[#allocation56_spill] sm:$0xff]  ;;  %v1379_v35 = vld [vmem:[%s4519_s5 + $0x10] sm:$0xff] }
 0x17e   :  { %1136 = vmatmul.mubr.f32.vlgmr.msra.gmra.mxu0 %v3529_v8  ;;  %1215 = vmatprep.subr.mxu0 %v4659_v37  ;;  %v4669_v8 = vld [vmem:[#allocation37_spill] sm:$0xff]  ;;  %v2092_v36 = vld [vmem:[%s4519_s5 + $0x90] sm:$0xff] }
 0x17f   :  { %1317 = vmatpush1.msra.mxu1 %v3930_v10  ;;  %1216 = vmatpush1.msra.mxu0 %v4660_v38  ;;  %v4689_v10 = vld [vmem:[#allocation57_spill] sm:$0xff] }
 0x180   :  { %1318 = vmatprep.subr.mxu1 %v3937_v4  ;;  %1217 = vmatprep.subr.mxu0 %v4661_v39  ;;  %v4690_v4 = vld [vmem:[#allocation58_spill] sm:$0xff]  ;;  %v1377_v39 = vld [vmem:[%s4519_s5] sm:$0xff] }
 0x181   :  { %1319 = vmatpush1.msra.mxu1 %v3944_v5  ;;  %1218 = vmatpush1.msra.mxu0 %v4662_v41  ;;  %v1392_v5 = vld [vmem:[%s4519_s5 + $0x78] sm:$0xff]  ;;  %v1378_v37 = vld [vmem:[%s4519_s5 + $0x8] sm:$0xff] }
 0x182   :  { %1320 = vmatprep.subr.mxu1 %v3951_v16  ;;  %1219 = vmatprep.subr.mxu0 %v4663_v42  ;;  %v2105_v16 = vld [vmem:[%s4519_s5 + $0xf8] sm:$0xff]  ;;  %v2091_v38 = vld [vmem:[%s4519_s5 + $0x88] sm:$0xff] }
 0x183   :  { %1321 = vmatpush1.msra.mxu1 %v3958_v22  ;;  %1220 = vmatpush1.msra.mxu0 %v4664_v43  ;;  %v1391_v22 = vld [vmem:[%s4519_s5 + $0x70] sm:$0xff] }
 0x184   :  { %1322 = vmatprep.subr.mxu1 %v3965_v23  ;;  %1221 = vmatprep.subr.mxu0 %v4665_v45  ;;  %v1390_v23 = vld [vmem:[%s4519_s5 + $0x68] sm:$0xff] }
 0x185   :  { %1323 = vmatpush1.msra.mxu1 %v3972_v24  ;;  %1356 = vmatprep.mubr.f32.mxu1 %v4609_v6  ;;  %v2103_v24 = vld [vmem:[%s4519_s5 + $0xe8] sm:$0xff] }
 0x186   :  { %1222 = vmatpush1.msra.mxu0 %v4666_v0  ;;  %1357 = vmatmul.mubr.f32.vlgmr.msra.gmra.mxu1 %v1290_v14 }
 0x187   :  { %1223 = vmatprep.subr.mxu0 %v4667_v46  ;;  %1279 = vmatprep.mubr.f32.mxu0 %v4609_v6 }
 0x188   :  { %1224 = vmatpush1.msra.mxu0 %v4668_v18  ;;  %2278 = vmatprep.subr.mxu1 %v4609_v6 }
 0x189   :  { %1225 = vmatprep.subr.mxu0 %v4669_v8  ;;  %2279 = vmatpush3.msra.mxu1 %v1392_v5 }
 0x18a   :  { %1226 = vmatpush1.msra.mxu0 %v4670_v47  ;;  %2280 = vmatprep.subr.mxu1 %v4609_v6 }
 0x18b   :  { %1227 = vmatprep.subr.mxu0 %v4671_v48  ;;  %2281 = vmatpush3.msra.mxu1 %v1391_v22 }
 0x18c   :  { %1228 = vmatpush1.msra.mxu0 %v4672_v49  ;;  %2282 = vmatprep.subr.mxu1 %v4609_v6 }
 0x18d   :  { %1229 = vmatprep.subr.mxu0 %v4673_v52  ;;  %2283 = vmatpush3.msra.mxu1 %v1390_v23 }
 0x18e   :  { %1230 = vmatpush1.msra.mxu0 %v4674_v20  ;;  %2284 = vmatprep.subr.mxu1 %v4609_v6 }
 0x18f   :  { %1231 = vmatprep.subr.mxu0 %v4675_v26  ;;  %2285 = vmatpush3.msra.mxu1 %v1389_v50 }
 0x190   :  { %1232 = vmatpush1.msra.mxu0 %v4676_v53  ;;  %2286 = vmatprep.subr.mxu1 %v4609_v6 }
 0x191   :  { %1233 = vmatprep.subr.mxu0 %v4677_v19  ;;  %2287 = vmatpush3.msra.mxu1 %v1388_v54 }
 0x192   :  { %1234 = vmatpush1.msra.mxu0 %v4678_v7  ;;  %2288 = vmatprep.subr.mxu1 %v4609_v6 }
 0x193   :  { %1235 = vmatprep.subr.mxu0 %v4679_v15  ;;  %2289 = vmatpush3.msra.mxu1 %v1387_v56 }
 0x194   :  { %1236 = vmatpush1.msra.mxu0 %v4680_v21  ;;  %2290 = vmatprep.subr.mxu1 %v4609_v6 }
 0x195   :  { %1237 = vmatprep.subr.mxu0 %v4681_v63  ;;  %2291 = vmatpush3.msra.mxu1 %v1386_v58 }
 0x196   :  { %1238 = vmatpush1.msra.mxu0 %v4682_v62  ;;  %2292 = vmatprep.subr.mxu1 %v4609_v6 }
 0x197   :  { %1239 = vmatprep.subr.mxu0 %v4683_v1  ;;  %2293 = vmatpush3.msra.mxu1 %v1385_v60  ;;  %v2136_v60 = vld [vmem:[%s4519_s5 + $0x1f0] sm:$0xff] }
 0x198   :  { %1240 = vmatpush1.msra.mxu0 %v4684_v2  ;;  %2294 = vmatprep.subr.mxu1 %v4609_v6 }
 0x199   :  { %1241 = vmatprep.subr.mxu0 %v4685_v12  ;;  %2295 = vmatpush3.msra.mxu1 %v1384_v13  ;;  %v2135_v13 = vld [vmem:[%s4519_s5 + $0x1e8] sm:$0xff] }
 0x19a   :  { %1242 = vmatpush1.msra.mxu0 %v4686_v17  ;;  %2296 = vmatprep.subr.mxu1 %v4609_v6 }
 0x19b   :  { %1243 = vmatprep.subr.mxu0 %v4687_v3  ;;  %2297 = vmatpush3.msra.mxu1 %v1383_v27  ;;  %v2134_v27 = vld [vmem:[%s4519_s5 + $0x1e0] sm:$0xff] }
 0x19c   :  { %1244 = vmatpush1.msra.mxu0 %v4688_v11  ;;  %2298 = vmatprep.subr.mxu1 %v4609_v6 }
 0x19d   :  { %1245 = vmatprep.subr.mxu0 %v4689_v10  ;;  %2299 = vmatpush3.msra.mxu1 %v1382_v29  ;;  %v2133_v29 = vld [vmem:[%s4519_s5 + $0x1d8] sm:$0xff] }
 0x19e   :  { %1246 = vmatpush1.msra.mxu0 %v4690_v4  ;;  %2300 = vmatprep.subr.mxu1 %v4609_v6 }
 0x19f   :  { %1280 = vmatmul.mubr.f32.vlgmr.msra.gmra.mxu0 %v3402_v9  ;;  %2243 = vmatprep.subr.mxu0 %v4609_v6  ;;  %v2104_v9 = vld [vmem:[%s4519_s5 + $0xf0] sm:$0xff] }
 0x1a0   :  { %2244 = vmatpush3.msra.mxu0 %v2105_v16  ;;  %2301 = vmatpush3.msra.mxu1 %v1381_v31  ;;  %v2132_v31 = vld [vmem:[%s4519_s5 + $0x1d0] sm:$0xff] }
 0x1a1   :  { %2245 = vmatprep.subr.mxu0 %v4609_v6  ;;  %2302 = vmatprep.subr.mxu1 %v4609_v6 }
 0x1a2   :  { %2246 = vmatpush3.msra.mxu0 %v2104_v9  ;;  %2303 = vmatpush3.msra.mxu1 %v1380_v33  ;;  %v2131_v33 = vld [vmem:[%s4519_s5 + $0x1c8] sm:$0xff] }
 0x1a3   :  { %2247 = vmatprep.subr.mxu0 %v4609_v6  ;;  %2304 = vmatprep.subr.mxu1 %v4609_v6 }
 0x1a4   :  { %2248 = vmatpush3.msra.mxu0 %v2103_v24  ;;  %2305 = vmatpush3.msra.mxu1 %v1379_v35  ;;  %v2130_v35 = vld [vmem:[%s4519_s5 + $0x1c0] sm:$0xff] }
 0x1a5   :  { %2249 = vmatprep.subr.mxu0 %v4609_v6  ;;  %2306 = vmatprep.subr.mxu1 %v4609_v6 }
 0x1a6   :  { %2250 = vmatpush3.msra.mxu0 %v2102_v51  ;;  %2307 = vmatpush3.msra.mxu1 %v1378_v37  ;;  %v2089_v51 = vld [vmem:[%s4518_s4] ss:$0 sm:$0xff]  ;;  %v2129_v37 = vld [vmem:[%s4519_s5 + $0x1b8] sm:$0xff] }
 0x1a7   :  { %2251 = vmatprep.subr.mxu0 %v4609_v6  ;;  %2308 = vmatprep.subr.mxu1 %v4609_v6 }
 0x1a8   :  { %2252 = vmatpush3.msra.mxu0 %v2101_v55  ;;  %2309 = vmatpush3.msra.mxu1 %v1377_v39  ;;  %v2128_v39 = vld [vmem:[%s4519_s5 + $0x1b0] sm:$0xff] }
 0x1a9   :  { %2253 = vmatprep.subr.mxu0 %v4609_v6  ;;  %2310 = vmatprep.mubr.msk.f32.mxu1 %vm2479_vm3, %v4609_v6 }
 0x1aa   :  { %2254 = vmatpush3.msra.mxu0 %v2100_v57  ;;  %2348 = vmatprep.subr.mxu1 %v4609_v6  ;;  %v2137_v57 = vld [vmem:[%s4519_s5 + $0x1f8] sm:$0xff] }
 0x1ab   :  { %2255 = vmatprep.subr.mxu0 %v4609_v6  ;;  %2275 = vmatprep.mubr.msk.f32.mxu0 %vm2479_vm3, %v4609_v6 }
 0x1ac   :  { %2256 = vmatpush3.msra.mxu0 %v2099_v59  ;;  %v2121_v59 = vld [vmem:[%s4519_s5 + $0x178] sm:$0xff] }
 0x1ad   :  { %2257 = vmatprep.subr.mxu0 %v4609_v6 }
 0x1ae   :  { %2258 = vmatpush3.msra.mxu0 %v2098_v61  ;;  %v2120_v61 = vld [vmem:[%s4519_s5 + $0x170] sm:$0xff] }
 0x1af   :  { %2259 = vmatprep.subr.mxu0 %v4609_v6 }
 0x1b0   :  { %2260 = vmatpush3.msra.mxu0 %v2097_v25  ;;  %v2119_v25 = vld [vmem:[%s4519_s5 + $0x168] sm:$0xff] }
 0x1b1   :  { %2261 = vmatprep.subr.mxu0 %v4609_v6 }
 0x1b2   :  { %2262 = vmatpush3.msra.mxu0 %v2096_v28  ;;  %v660_v42 = vpop.f32.mrf.mxu1  ;;  %v2118_v28 = vld [vmem:[%s4519_s5 + $0x160] sm:$0xff] }
 0x1b3   :  { %2263 = vmatprep.subr.mxu0 %v4609_v6 }
 0x1b4   :  { %2264 = vmatpush3.msra.mxu0 %v2095_v30  ;;  %v662_v45 = vpop.f32.mrf.mxu1  ;;  %v2117_v30 = vld [vmem:[%s4519_s5 + $0x158] sm:$0xff] }
 0x1b5   :  { %2265 = vmatprep.subr.mxu0 %v4609_v6 }
 0x1b6   :  { %2266 = vmatpush3.msra.mxu0 %v2094_v32  ;;  %v2116_v32 = vld [vmem:[%s4519_s5 + $0x150] sm:$0xff] }
 0x1b7   :  { %2267 = vmatprep.subr.mxu0 %v4609_v6 }
 0x1b8   :  { %2268 = vmatpush3.msra.mxu0 %v2093_v34  ;;  %v2115_v34 = vld [vmem:[%s4519_s5 + $0x148] sm:$0xff] }
 0x1b9   :  { %2269 = vmatprep.subr.mxu0 %v4609_v6 }
 0x1ba   :  { %2270 = vmatpush3.msra.mxu0 %v2092_v36  ;;  %v2114_v36 = vld [vmem:[%s4519_s5 + $0x140] sm:$0xff] }
 0x1bb   :  { %2271 = vmatprep.subr.mxu0 %v4609_v6 }
 0x1bc   :  { %2272 = vmatpush3.msra.mxu0 %v2091_v38  ;;  %v2113_v38 = vld [vmem:[%s4519_s5 + $0x138] sm:$0xff] }
 0x1bd   :  { %2273 = vmatprep.subr.mxu0 %v4609_v6 }
 0x1be   :  { %2274 = vmatpush3.msra.mxu0 %v2090_v40  ;;  %v2112_v40 = vld [vmem:[%s4519_s5 + $0x130] sm:$0xff] }
 0x1bf   :  { %2313 = vmatprep.subr.mxu0 %v4609_v6 }
 0x1da   :  { %v589_v41 = vpop.f32.mrf.mxu0 }
 0x1db   :  { %v661_v53 = vadd.f32 %v660_v42, %v589_v41  ;;  %v2127_v41 = vld [vmem:[%s4519_s5 + $0x1a8] sm:$0xff] }
 0x1dc   :  { %v591_v43 = vpop.f32.mrf.mxu0  ;;  %v2111_v42 = vld [vmem:[%s4519_s5 + $0x128] sm:$0xff] }
 0x1dd   :  { %v663_v19 = vadd.f32 %v662_v45, %v591_v43  ;;  %v2126_v43 = vld [vmem:[%s4519_s5 + $0x1a0] sm:$0xff]  ;;  %v2125_v45 = vld [vmem:[%s4519_s5 + $0x198] sm:$0xff] }
 0x1e1   :  { %v883_v14 = vpop.f32.mrf.mxu1 }
 0x1e3   :  { %v885_v18 = vpop.f32.mrf.mxu1 }
 0x1fa   :  { %v771_v44 = vpop.f32.mrf.mxu0 }
 0x1fb   :  { %v776_v21 = vadd.f32 %v771_v44, %v661_v53  ;;  %v2110_v44 = vld [vmem:[%s4519_s5 + $0x120] sm:$0xff]  ;;  %v1755_v53 = vld [vmem:[%s4521_s7 + $0x68] sm:$0xff] }
 0x1fc   :  { %v773_v0 = vpop.f32.mrf.mxu0 }
 0x1fd   :  { %v777_v63 = vadd.f32 %v773_v0, %v663_v19  ;;  %v888_v11 = vadd.f32 %v883_v14, %v776_v21  ;;  %v2109_v14 = vld [vmem:[%s4519_s5 + $0x118] sm:$0xff]  ;;  %v2124_v0 = vld [vmem:[%s4519_s5 + $0x190] sm:$0xff]  ;;  %v1754_v19 = vld [vmem:[%s4521_s7 + $0x60] sm:$0xff] }
 0x1fe   :  { %v1751_v21 = vld [vmem:[%s4521_s7 + $0x48] sm:$0xff] }
 0x1ff   :  { %v889_v10 = vadd.f32 %v885_v18, %v777_v63  ;;  %v2123_v18 = vld [vmem:[%s4519_s5 + $0x188] sm:$0xff]  ;;  %v1750_v63 = vld [vmem:[%s4521_s7 + $0x40] sm:$0xff] }
 0x202   :  { %v1066_v8 = vpop.f32.mrf.mxu1 }
 0x204   :  { %v1068_v49 = vpop.f32.mrf.mxu1 }
 0x21c   :  { %v993_v46 = vpop.f32.mrf.mxu0 }
 0x21d   :  { %v998_v22 = vadd.f32 %v993_v46, %v888_v11  ;;  %v2108_v46 = vld [vmem:[%s4519_s5 + $0x110] sm:$0xff]  ;;  %v1743_v11 = vld [vmem:[%s4521_s7 + $0x8] sm:$0xff] }
 0x21e   :  { %v995_v47 = vpop.f32.mrf.mxu0 }
 0x21f   :  { %v999_v9 = vadd.f32 %v995_v47, %v889_v10  ;;  %v2122_v47 = vld [vmem:[%s4519_s5 + $0x180] sm:$0xff] }
 0x220   :  { %v1742_v10 = vld [vmem:[%s4521_s7] sm:$0xff] }
 0x224   :  { %v1208_v52 = vpop.f32.mrf.mxu1 }
 0x226   :  { %v1210_v15 = vpop.f32.mrf.mxu1 }
 0x23e   :  { %v1137_v48 = vpop.f32.mrf.mxu0 }
 0x23f   :  { %v1138_v26 = vadd.f32 %v1137_v48, %v1066_v8  ;;  %v2107_v8 = vld [vmem:[%s4519_s5 + $0x108] sm:$0xff] }
 0x240   :  { %v1139_v20 = vpop.f32.mrf.mxu0 }
 0x241   :  { %v1140_v7 = vadd.f32 %v1139_v20, %v1068_v49  ;;  %v1213_v62 = vadd.f32 %v1208_v52, %v1138_v26  ;;  %v2106_v49 = vld [vmem:[%s4519_s5 + $0x100] sm:$0xff]  ;;  %v1757_v20 = vld [vmem:[%s4521_s7 + $0x78] sm:$0xff]  ;;  %v1756_v26 = vld [vmem:[%s4521_s7 + $0x70] sm:$0xff] }
 0x243   :  { %v1214_v17 = vadd.f32 %v1210_v15, %v1140_v7  ;;  %v1753_v7 = vld [vmem:[%s4521_s7 + $0x58] sm:$0xff]  ;;  %v1752_v15 = vld [vmem:[%s4521_s7 + $0x50] sm:$0xff] }
 0x246   :  { %v1358_v1 = vpop.f32.mrf.mxu1 }
 0x248   :  { %v1360_v16 = vpop.f32.mrf.mxu1 }
 0x25f   :  { %v1281_v2 = vpop.f32.mrf.mxu0 }
 0x260   :  { %v1286_v12 = vadd.f32 %v1281_v2, %v1213_v62  ;;  %v1749_v62 = vld [vmem:[%s4521_s7 + $0x38] sm:$0xff]  ;;  %v1747_v2 = vld [vmem:[%s4521_s7 + $0x28] sm:$0xff] }
 0x261   :  { %v1283_v3 = vpop.f32.mrf.mxu0 }
 0x262   :  { %v1363_v4 = vadd.f32 %v1358_v1, %v1286_v12  ;;  %v1287_v5 = vadd.f32 %v1283_v3, %v1214_v17  ;;  %v1748_v1 = vld [vmem:[%s4521_s7 + $0x30] sm:$0xff]  ;;  %v1746_v12 = vld [vmem:[%s4521_s7 + $0x20] sm:$0xff]  ;;  %v1745_v17 = vld [vmem:[%s4521_s7 + $0x18] sm:$0xff] }
 0x263   :  { %v1744_v3 = vld [vmem:[%s4521_s7 + $0x10] sm:$0xff] }
 0x264   :  { %v1364_v23 = vadd.f32 %v1360_v16, %v1287_v5  ;;  %v1365_v24 = vmax.f32 %v998_v22, %v1363_v4  ;;  %v1851_v4 = vld [vmem:[%s4523_s9 + $0x78] sm:$0xff]  ;;  %v1850_v5 = vld [vmem:[%s4523_s9 + $0x70] sm:$0xff]  ;;  %v1849_v16 = vld [vmem:[%s4523_s9 + $0x68] sm:$0xff] }
 0x265   :  { %v1848_v22 = vld [vmem:[%s4523_s9 + $0x60] sm:$0xff] }
 0x266   :  { %v1366_v50 = vmax.f32 %v999_v9, %v1364_v23  ;;  %v1847_v9 = vld [vmem:[%s4523_s9 + $0x58] sm:$0xff]  ;;  %v1846_v23 = vld [vmem:[%s4523_s9 + $0x50] sm:$0xff] }
 0x268   :  { %v1367_v54 = vmax.f32 %v1365_v24, %v1366_v50  ;;  %v1845_v24 = vld [vmem:[%s4523_s9 + $0x48] sm:$0xff]  ;;  %v1844_v50 = vld [vmem:[%s4523_s9 + $0x40] sm:$0xff] }
 0x26a   :  { %v1375_v55 = vadd.f32 %v2089_v51, %v1367_v54  ;;  %v1843_v51 = vld [vmem:[%s4523_s9 + $0x38] sm:$0xff]  ;;  %v1842_v54 = vld [vmem:[%s4523_s9 + $0x30] sm:$0xff] }
 0x26c   :  { %v4234_v56 = vmax.f32 %v1375_v55, 0.0  ;;  %v1841_v55 = vld [vmem:[%s4523_s9 + $0x28] sm:$0xff] }
 0x26e   :  { %2311 = vmatmul.mubr.f32.vlgmr.msra.gmra.mxu1 %v4234_v56  ;;  %v1411_v58 = vrot.slane %v4234_v56, 2  ;;  %v1660_v48 = vrot.slane %v4234_v56, 6  ;;  %v1570_v52 = vrot.slane %v4234_v56, 4  ;;  %v1840_v56 = vld [vmem:[%s4523_s9 + $0x20] sm:$0xff] }
 0x26f   :  { %2349 = vmatpush3.msra.mxu1 %v2137_v57  ;;  %2380 = vmatprep.mubr.msk.f32.mxu1 %vm2479_vm3, %v4609_v6  ;;  %v1839_v57 = vld [vmem:[%s4523_s9 + $0x18] sm:$0xff] }
 0x270   :  { %2350 = vmatprep.subr.mxu1 %v4609_v6  ;;  %2276 = vmatmul.mubr.f32.vlgmr.msra.gmra.mxu0 %v1411_v58 }
 0x271   :  { %2314 = vmatpush3.msra.mxu0 %v2121_v59  ;;  %2351 = vmatpush3.msra.mxu1 %v2136_v60 }
 0x272   :  { %2315 = vmatprep.subr.mxu0 %v4609_v6  ;;  %2352 = vmatprep.subr.mxu1 %v4609_v6 }
 0x273   :  { %2316 = vmatpush3.msra.mxu0 %v2120_v61  ;;  %2353 = vmatpush3.msra.mxu1 %v2135_v13 }
 0x274   :  { %2317 = vmatprep.subr.mxu0 %v4609_v6  ;;  %2354 = vmatprep.subr.mxu1 %v4609_v6 }
 0x275   :  { %2318 = vmatpush3.msra.mxu0 %v2119_v25  ;;  %2355 = vmatpush3.msra.mxu1 %v2134_v27 }
 0x276   :  { %2319 = vmatprep.subr.mxu0 %v4609_v6  ;;  %2356 = vmatprep.subr.mxu1 %v4609_v6 }
 0x277   :  { %2320 = vmatpush3.msra.mxu0 %v2118_v28  ;;  %2357 = vmatpush3.msra.mxu1 %v2133_v29 }
 0x278   :  { %2321 = vmatprep.subr.mxu0 %v4609_v6  ;;  %2358 = vmatprep.subr.mxu1 %v4609_v6 }
 0x279   :  { %2322 = vmatpush3.msra.mxu0 %v2117_v30  ;;  %2359 = vmatpush3.msra.mxu1 %v2132_v31  ;;  %v2138_v30 = vld [vmem:[%s4520_s6] ss:$0 sm:$0xff] }
 0x27a   :  { %2323 = vmatprep.subr.mxu0 %v4609_v6  ;;  %2360 = vmatprep.subr.mxu1 %v4609_v6 }
 0x27b   :  { %2324 = vmatpush3.msra.mxu0 %v2116_v32  ;;  %2361 = vmatpush3.msra.mxu1 %v2131_v33 }
 0x27c   :  { %2325 = vmatprep.subr.mxu0 %v4609_v6  ;;  %2362 = vmatprep.subr.mxu1 %v4609_v6 }
 0x27d   :  { %2326 = vmatpush3.msra.mxu0 %v2115_v34  ;;  %2363 = vmatpush3.msra.mxu1 %v2130_v35  ;;  %v1838_v35 = vld [vmem:[%s4523_s9 + $0x10] sm:$0xff] }
 0x27e   :  { %2327 = vmatprep.subr.mxu0 %v4609_v6  ;;  %2364 = vmatprep.subr.mxu1 %v4609_v6 }
 0x27f   :  { %2328 = vmatpush3.msra.mxu0 %v2114_v36  ;;  %2365 = vmatpush3.msra.mxu1 %v2129_v37  ;;  %v1837_v36 = vld [vmem:[%s4523_s9 + $0x8] sm:$0xff]  ;;  %v1836_v37 = vld [vmem:[%s4523_s9] sm:$0xff]  ;;  %s2456_s9 = scalar_lea.vmem %s1937_s26, 32 }
 0x280   :  { %2329 = vmatprep.subr.mxu0 %v4609_v6  ;;  %2366 = vmatprep.subr.mxu1 %v4609_v6  ;;  %p2457_p0 = scmp.ne.s32.totalorder %s1937_s26, %s2456_s9  ;;  %p2462_p2 = scmp.lt.s32.totalorder %s2456_s9, %s2456_s9 }
 0x281   :  { %2330 = vmatpush3.msra.mxu0 %v2113_v38  ;;  %2367 = vmatpush3.msra.mxu1 %v2128_v39  ;;  %v2139_v38 = vld [vmem:[%s4522_s8] ss:$0 sm:$0xff] }
 0x282   :  { %2331 = vmatprep.subr.mxu0 %v4609_v6  ;;  %2368 = vmatprep.subr.mxu1 %v4609_v6  ;;  %p2463_p3 = por %p2462_p2, %p2461_p1 }
 0x283   :  { %2332 = vmatpush3.msra.mxu0 %v2112_v40  ;;  %2369 = vmatpush3.msra.mxu1 %v2127_v41 }
 0x284   :  { %2333 = vmatprep.subr.mxu0 %v4609_v6  ;;  %2370 = vmatprep.subr.mxu1 %v4609_v6  ;;  %p2464_p4 = pnand %p2463_p3, %p2457_p0 }
 0x285   :  { %2334 = vmatpush3.msra.mxu0 %v2111_v42  ;;  %2371 = vmatpush3.msra.mxu1 %v2126_v43  ;;  %v2140_v43 = vld [vmem:[%s4524_s10] ss:$0 sm:$0xff] }
 0x286   :  { %2335 = vmatprep.subr.mxu0 %v4609_v6  ;;  %2372 = vmatprep.subr.mxu1 %v4609_v6 }
 0x287   :  { %2336 = vmatpush3.msra.mxu0 %v2110_v44  ;;  %2373 = vmatpush3.msra.mxu1 %v2125_v45 }
 0x288   :  { %2337 = vmatprep.subr.mxu0 %v4609_v6  ;;  %2374 = vmatprep.subr.mxu1 %v4609_v6 }
 0x289   :  { %2338 = vmatpush3.msra.mxu0 %v2109_v14  ;;  %2375 = vmatpush3.msra.mxu1 %v2124_v0 }
 0x28a   :  { %2339 = vmatprep.subr.mxu0 %v4609_v6  ;;  %2376 = vmatprep.subr.mxu1 %v4609_v6 }
 0x28b   :  { %2340 = vmatpush3.msra.mxu0 %v2108_v46  ;;  %2377 = vmatpush3.msra.mxu1 %v2123_v18 }
 0x28c   :  { %2341 = vmatprep.subr.mxu0 %v4609_v6  ;;  %2378 = vmatprep.subr.mxu1 %v4609_v6 }
 0x28d   :  { %2342 = vmatpush3.msra.mxu0 %v2107_v8  ;;  %2379 = vmatpush3.msra.mxu1 %v2122_v47 }
 0x28e   :  { %2343 = vmatprep.subr.mxu0 %v4609_v6  ;;  %2381 = vmatmul.mubr.f32.vlgmr.msra.gmra.mxu1 %v1660_v48 }
 0x28f   :  { %2344 = vmatpush3.msra.mxu0 %v2106_v49  ;;  %2345 = vmatprep.mubr.msk.f32.mxu0 %vm2479_vm3, %v4609_v6 }
 0x290   :  { %2346 = vmatmul.mubr.f32.vlgmr.msra.gmra.mxu0 %v1570_v52  ;;  %2383 = vmatprep.subr.mxu0 %v4609_v6 }
 0x291   :  { %2415 = vmatprep.mubr.msk.f32.mxu0 %vm2479_vm3, %v4609_v6  ;;  %2418 = vmatprep.subr.mxu1 %v4609_v6 }
 0x292   :  { %2450 = vmatprep.mubr.msk.f32.mxu1 %vm2479_vm3, %v4609_v6  ;;  %2384 = vmatpush3.msra.mxu0 %v1757_v20 }
 0x293   :  { %2385 = vmatprep.subr.mxu0 %v4609_v6  ;;  %2419 = vmatpush3.msra.mxu1 %v1851_v4 }
 0x294   :  { %2386 = vmatpush3.msra.mxu0 %v1756_v26  ;;  %2420 = vmatprep.subr.mxu1 %v4609_v6 }
 0x295   :  { %2387 = vmatprep.subr.mxu0 %v4609_v6  ;;  %2421 = vmatpush3.msra.mxu1 %v1850_v5 }
 0x296   :  { %2388 = vmatpush3.msra.mxu0 %v1755_v53  ;;  %2422 = vmatprep.subr.mxu1 %v4609_v6 }
 0x297   :  { %2389 = vmatprep.subr.mxu0 %v4609_v6  ;;  %2423 = vmatpush3.msra.mxu1 %v1849_v16 }
 0x298   :  { %2390 = vmatpush3.msra.mxu0 %v1754_v19  ;;  %2424 = vmatprep.subr.mxu1 %v4609_v6 }
 0x299   :  { %2391 = vmatprep.subr.mxu0 %v4609_v6  ;;  %2425 = vmatpush3.msra.mxu1 %v1848_v22 }
 0x29a   :  { %2392 = vmatpush3.msra.mxu0 %v1753_v7  ;;  %2426 = vmatprep.subr.mxu1 %v4609_v6 }
 0x29b   :  { %2393 = vmatprep.subr.mxu0 %v4609_v6  ;;  %2427 = vmatpush3.msra.mxu1 %v1847_v9 }
 0x29c   :  { %2394 = vmatpush3.msra.mxu0 %v1752_v15  ;;  %2428 = vmatprep.subr.mxu1 %v4609_v6 }
 0x29d   :  { %2395 = vmatprep.subr.mxu0 %v4609_v6  ;;  %2429 = vmatpush3.msra.mxu1 %v1846_v23 }
 0x29e   :  { %2396 = vmatpush3.msra.mxu0 %v1751_v21  ;;  %2430 = vmatprep.subr.mxu1 %v4609_v6 }
 0x29f   :  { %2397 = vmatprep.subr.mxu0 %v4609_v6  ;;  %2431 = vmatpush3.msra.mxu1 %v1845_v24 }
 0x2a0   :  { %2398 = vmatpush3.msra.mxu0 %v1750_v63  ;;  %2432 = vmatprep.subr.mxu1 %v4609_v6 }
 0x2a1   :  { %2399 = vmatprep.subr.mxu0 %v4609_v6  ;;  %2433 = vmatpush3.msra.mxu1 %v1844_v50 }
 0x2a2   :  { %2400 = vmatpush3.msra.mxu0 %v1749_v62  ;;  %2434 = vmatprep.subr.mxu1 %v4609_v6 }
 0x2a3   :  { %2401 = vmatprep.subr.mxu0 %v4609_v6  ;;  %2435 = vmatpush3.msra.mxu1 %v1843_v51 }
 0x2a4   :  { %2402 = vmatpush3.msra.mxu0 %v1748_v1  ;;  %2436 = vmatprep.subr.mxu1 %v4609_v6 }
 0x2a5   :  { %2403 = vmatprep.subr.mxu0 %v4609_v6  ;;  %2437 = vmatpush3.msra.mxu1 %v1842_v54 }
 0x2a6   :  { %2404 = vmatpush3.msra.mxu0 %v1747_v2  ;;  %2438 = vmatprep.subr.mxu1 %v4609_v6 }
 0x2a7   :  { %2405 = vmatprep.subr.mxu0 %v4609_v6  ;;  %2439 = vmatpush3.msra.mxu1 %v1841_v55 }
 0x2a8   :  { %2406 = vmatpush3.msra.mxu0 %v1746_v12  ;;  %2440 = vmatprep.subr.mxu1 %v4609_v6 }
 0x2a9   :  { %2407 = vmatprep.subr.mxu0 %v4609_v6  ;;  %2441 = vmatpush3.msra.mxu1 %v1840_v56 }
 0x2aa   :  { %2408 = vmatpush3.msra.mxu0 %v1745_v17  ;;  %2442 = vmatprep.subr.mxu1 %v4609_v6 }
 0x2ab   :  { %2409 = vmatprep.subr.mxu0 %v4609_v6  ;;  %2443 = vmatpush3.msra.mxu1 %v1839_v57 }
 0x2ac   :  { %2410 = vmatpush3.msra.mxu0 %v1744_v3  ;;  %2444 = vmatprep.subr.mxu1 %v4609_v6 }
 0x2ad   :  { %2411 = vmatprep.subr.mxu0 %v4609_v6  ;;  %2445 = vmatpush3.msra.mxu1 %v1838_v35 }
 0x2ae   :  { %2412 = vmatpush3.msra.mxu0 %v1743_v11  ;;  %2446 = vmatprep.subr.mxu1 %v4609_v6 }
 0x2af   :  { %2413 = vmatprep.subr.mxu0 %v4609_v6  ;;  %2447 = vmatpush3.msra.mxu1 %v1837_v36 }
 0x2b0   :  { %2414 = vmatpush3.msra.mxu0 %v1742_v10  ;;  %2448 = vmatprep.subr.mxu1 %v4609_v6 }
 0x2b1   :  { %2449 = vmatpush3.msra.mxu1 %v1836_v37 }
 0x32e   :  { %v1549_v58 = vpop.f32.mrf.mxu1 }
 0x330   :  { %v1479_v59 = vpop.f32.mrf.mxu0  ;;  %v2312_v60 = vpop.f32.mrf.mxu1 }
 0x331   :  { %v1550_v25 = vadd.f32 %v1549_v58, %v1479_v59 }
 0x332   :  { %v2277_v61 = vpop.f32.mrf.mxu0 }
 0x34e   :  { %v1728_v13 = vpop.f32.mrf.mxu1 }
 0x350   :  { %v1638_v27 = vpop.f32.mrf.mxu0  ;;  %v2382_v28 = vpop.f32.mrf.mxu1 }
 0x351   :  { %v1642_v29 = vadd.f32 %v1638_v27, %v1550_v25 }
 0x352   :  { %v2347_v31 = vpop.f32.mrf.mxu0 }
 0x353   :  { %v1732_v32 = vadd.f32 %v1728_v13, %v1642_v29 }
 0x355   :  { %v1740_v33 = vadd.f32 %v2138_v30, %v1732_v32 }
 0x357   :  { %v1741_v34 = vmax.f32 %v1740_v33, 0.0 }
 0x359   :  { %2416 = vmatmul.mubr.f32.vlgmr.msra.gmra.mxu0 %v1741_v34 }
 0x419   :  { %v1831_v39 = vpop.f32.mrf.mxu0 }
 0x41a   :  { %v1832_v40 = vadd.f32 %v2139_v38, %v1831_v39 }
 0x41b   :  { %v2417_v41 = vpop.f32.mrf.mxu0 }
 0x41c   :  { %v1835_v42 = vmax.f32 %v1832_v40, 0.0 }
 0x41e   :  { %2451 = vmatmul.mubr.f32.vlgmr.msra.gmra.mxu1 %v1835_v42 }
 0x4de   :  { %v1925_v6 = vpop.f32.mrf.mxu1 }
 0x4df   :  { %v1926_v44 = vadd.f32 %v2140_v43, %v1925_v6 }
 0x4e0   :  { %v2452_v45 = vpop.f32.mrf.mxu1 }
 0x4e1   :  { %1929 = vst [vmem:[#allocation2] sm:$0x3] %v1926_v44 }
 0x4e2   :  { %2467 = shalt.err (!%p2464_p4)
}
 0x4e3   :  { %1939 = dma.vmem_to_hbm [thread:$0]  %s1937_s26, 32, %s4525_s11, [#allocation3]  }
 0x4e4   :  { %2476 = dma.done.wait [#allocation3], 32  }
 0x4e5   :  { %2477 = vsyncadd [#allocation3], 4294967264 }
 0x4e6   :  { %1943 = vsyncpa [#allocation3], 1 }

</bundles_post_ra>
